<compile_context>
chip_gen: v6e
topology: v6e:2x2x1
jax: 0.10.0
libtpu: 0.0.40
codegen_flags: <defaults>
</compile_context>

<pallas_src>
import functools
import math

import jax
import jax.numpy as jnp
from jax.experimental import pallas as pl
from jax.experimental.pallas import tpu as pltpu


def _round_up(x, m):
    return (x + m - 1) // m * m


def _padded_bytes(rows, cols, itemsize):
    """VMEM bytes of a [rows, cols] slab after sublane/lane padding."""
    sub = {4: 8, 2: 16, 1: 32}[itemsize]
    return _round_up(max(rows, 1), sub) * _round_up(max(cols, 1), 128) * itemsize


def _vmem_capacity_bytes():
    """Per-core VMEM capacity; conservative 64 MiB fallback if the query fails."""
    try:
        info = pltpu.get_tpu_info()
        cap = getattr(info, "vmem_capacity_bytes", None)
        if cap:
            return int(cap)
    except Exception:
        pass
    return 64 << 20


def _choose_layout(n, k, f_in, f_out_pad, vmem_cap, tm=None, a_resident=None):
    """Pick (tm, n_pad, resident_A, vmem_need): prefer a resident A^T, then big tiles."""
    budget = max(int(vmem_cap) - (8 << 20), 24 << 20)
    n128 = _round_up(n, 128)
    if tm is not None:
        cand_tms = [max(128, _round_up(tm, 128))]
    else:
        cand_tms = [t for t in (1024, 512, 256, 128) if t <= n128] or [128]

    def footprint(tm_, n_pad, resident):
        fixed = (_padded_bytes(n_pad, f_in, 4)            # resident signal X_0
                 + _padded_bytes(n_pad, 1, 4)             # resident D^-1/2
                 + k * _padded_bytes(f_in, f_out_pad, 4)  # resident weights
                 + _padded_bytes(1, f_out_pad, 4)         # resident bias
                 + k * _padded_bytes(n_pad, f_in, 4)      # all-terms scratch
                 + _padded_bytes(n_pad, f_in, 2)          # bf16 level RHS scratch
                 + 2 * _padded_bytes(tm_, f_out_pad, 4)   # double-buffered output
                 + 2 * _padded_bytes(tm_, n_pad, 2))      # bf16 A-tile upcast temps
        a_bytes = (_padded_bytes(n_pad, n_pad, 1) if resident
                   else 2 * _padded_bytes(tm_, n_pad, 1))
        return fixed + a_bytes

    resident_opts = (True, False) if a_resident is None else (bool(a_resident),)
    for resident in resident_opts:               # residency first: kills (k-1)x re-streams
        for tm_ in cand_tms:                     # then the largest tile that fits
            n_pad = _round_up(max(n, tm_), tm_)
            need = footprint(tm_, n_pad, resident)
            if need <= budget:
                return tm_, n_pad, resident, need
    tm_ = cand_tms[-1]
    n_pad = _round_up(max(n, tm_), tm_)
    resident = resident_opts[-1]
    return tm_, n_pad, resident, footprint(tm_, n_pad, resident)


def _cheb_conv_kernel(lam_ref, x_ref, d_ref, a_ref, w_ref, b_ref, o_ref,
                      xall_ref, xsb_ref, *, k, tm, a_resident):
    """Grid step: level s = program_id(0) produces X_{s+1} for row tile i = program_id(1);
    at the final level (s == k-2) it also emits the fused linear + ReLU output tile."""
    s = pl.program_id(0)
    i = pl.program_id(1)
    row0 = pl.multiple_of(i * tm, tm)

    re_norm = 2.0 / lam_ref[0]
    d_tile = d_ref[pl.ds(row0, tm), :]                        # [tm, 1]

    # ---- once per level: refresh the level-wide bf16 matmul RHS (hoisted cast) ----
    @pl.when(i == 0)
    def _():
        @pl.when(s == 0)
        def _():
            x0 = x_ref[...]
            xall_ref[0] = x0                                  # X_0 -> term slot 0
            xsb_ref[...] = (d_ref[...] * x0).astype(jnp.bfloat16)

        @pl.when(s > 0)
        def _():
            xsb_ref[...] = (d_ref[...] * xall_ref[s]).astype(jnp.bfloat16)

    # ---- Chebyshev recursion for this row tile ------------------------------------
    # h = D^-1/2 A^T D^-1/2 X_s : int8 0/1 adjacency upcast to bf16 for the MXU
    # (f32 accumulation); degree scaling applied to the narrow [*, F_in] tensors.
    if a_resident:
        a_tile = a_ref[pl.ds(row0, tm), :]                    # rows of resident A^T
    else:
        a_tile = a_ref[...]                                   # streamed row tile
    h = jnp.dot(a_tile.astype(jnp.bfloat16), xsb_ref[...],
                preferred_element_type=jnp.float32)           # [tm, F_in]
    h = d_tile * h

    x_s = xall_ref[s, pl.ds(row0, tm), :]                     # X_s rows (f32)
    x_sm1 = xall_ref[jnp.maximum(s - 1, 0), pl.ds(row0, tm), :]

    first = s == 0
    c_h = jnp.where(first, -re_norm, -2.0 * re_norm)
    c_p = jnp.where(first, re_norm - 1.0, 2.0 * (re_norm - 1.0))
    c_m = jnp.where(first, 0.0, 1.0)                          # X_{-1} == 0
    x_next = c_h * h + c_p * x_s - c_m * x_sm1                # X_{s+1}, this tile
    xall_ref[s + 1, pl.ds(row0, tm), :] = x_next

    # ---- final level only: fused linear + ReLU (no per-level accumulator) ---------
    @pl.when(s == k - 2)
    def _():
        acc = b_ref[...] + jnp.dot(x_next, w_ref[k - 1],
                                   preferred_element_type=jnp.float32)
        for t in range(k - 1):                                # static unroll over terms
            acc = acc + jnp.dot(xall_ref[t, pl.ds(row0, tm), :], w_ref[t],
                                preferred_element_type=jnp.float32)
        o_ref[...] = jnp.maximum(acc, 0.0)


def _linear_relu_kernel(x_ref, w_ref, b_ref, o_ref):
    """k == 1 degenerate path: out = ReLU(X_0 @ W + b); no adjacency is read."""
    o_ref[...] = jnp.maximum(
        b_ref[...] + jnp.dot(x_ref[...], w_ref[...], preferred_element_type=jnp.float32),
        0.0)


def cheb_conv(adj, signal, weight, bias, k, lambda_max=None, tm=None, a_resident=None):
    """Cheb_Conv forward on a dense adjacency.

    adj        : [N, N]  adj[u, v] = multiplicity of edge u -> v (0/1 for simple graphs;
                 must hold small non-negative integers, matching DGL graph semantics).
    signal     : [N, F_in]
    weight     : [k*F_in, F_out]   (transpose of torch nn.Linear.weight)
    bias       : [F_out] or [1, F_out]
    lambda_max : shape-(1,) array or None (falls back to the module's constant 2.0).
    """
    n = adj.shape[0]
    f_in = signal.shape[1]
    f_out = weight.shape[1]
    assert weight.shape[0] == k * f_in

    if lambda_max is None:
        # TODO(synk): dgl.laplacian_lambda_max is a sparse eigen-solve with no Pallas
        # equivalent; use the torch module's exception-fallback constant 2.0.
        lambda_max = jnp.array([2.0], dtype=jnp.float32)
    lam = jnp.asarray(lambda_max, jnp.float32).reshape(-1)[:1]

    f_out_pad = _round_up(f_out, 128)                         # lane-dense output
    b_pad = jnp.zeros((1, f_out_pad), jnp.float32).at[:, :f_out].set(
        jnp.asarray(bias, jnp.float32).reshape(1, f_out))
    w_pad = jnp.zeros((k * f_in, f_out_pad), jnp.float32).at[:, :f_out].set(
        weight.astype(jnp.float32))

    vmem_cap = _vmem_capacity_bytes()

    if k == 1:
        # No recursion, no adjacency: out = ReLU(X_0 @ W + b).
        tm1 = max(128, _round_up(tm or min(512, _round_up(n, 128)), 128))
        n_pad = _round_up(max(n, tm1), tm1)
        x_pad = jnp.zeros((n_pad, f_in), jnp.float32).at[:n].set(signal.astype(jnp.float32))
        out_pad = pl.pallas_call(
            _linear_relu_kernel,
            out_shape=jax.ShapeDtypeStruct((n_pad, f_out_pad), jnp.float32),
            grid_spec=pltpu.PrefetchScalarGridSpec(
                num_scalar_prefetch=0,
                grid=(n_pad // tm1,),
                in_specs=[pl.BlockSpec((tm1, f_in), lambda i: (i, 0)),
                          pl.BlockSpec(memory_space=pltpu.MemorySpace.VMEM),
                          pl.BlockSpec(memory_space=pltpu.MemorySpace.VMEM)],
                out_specs=pl.BlockSpec((tm1, f_out_pad), lambda i: (i, 0)),
            ),
            compiler_params=pltpu.CompilerParams(dimension_semantics=("parallel",)),
        )(x_pad, w_pad, b_pad)
        return out_pad[:n, :f_out]

    tm, n_pad, resident, need = _choose_layout(
        n, k, f_in, f_out_pad, vmem_cap, tm=tm, a_resident=a_resident)

    # A^T as 8-bit integers (exact for 0/1), padded only if needed (no f32 [N_pad,N_pad]
    # intermediate).  DGL copy_u/sum aggregates over in-edges -> we need A^T @ (.).
    a_t = jnp.transpose(adj).astype(jnp.int8)
    if n_pad == n:
        a_pad = a_t
    else:
        a_pad = jnp.zeros((n_pad, n_pad), jnp.int8).at[:n, :n].set(a_t)

    in_deg = jnp.sum(adj.astype(jnp.float32), axis=0)
    d = jnp.power(jnp.maximum(in_deg, 1.0), -0.5)
    d_pad = jnp.ones((n_pad, 1), jnp.float32).at[:n, 0].set(d)   # pad value irrelevant

    x_pad = jnp.zeros((n_pad, f_in), jnp.float32).at[:n].set(signal.astype(jnp.float32))
    w3 = w_pad.reshape(k, f_in, f_out_pad)                       # per-term weight slabs

    if resident:
        # Whole A^T copied into VMEM once; the only O(N^2) HBM stream is paid once
        # instead of (k-1) times.
        a_spec = pl.BlockSpec(memory_space=pltpu.MemorySpace.VMEM)
    else:
        # Fallback for large N: row-tiled int8 stream, double-buffered by the BlockSpec,
        # re-streamed once per Chebyshev level.
        a_spec = pl.BlockSpec((tm, n_pad), lambda s, i: (i, 0))
        # TODO(synk): for N where even a (tm, N) int8 tile is huge, add a third
        # "arbitrary" grid axis over adjacency columns (contraction dim).

    vmem_limit = int(min(max(need + (16 << 20), 32 << 20),
                         max(vmem_cap - (2 << 20), 32 << 20)))

    kernel = functools.partial(_cheb_conv_kernel, k=k, tm=tm, a_resident=resident)

    out_pad = pl.pallas_call(
        kernel,
        out_shape=jax.ShapeDtypeStruct((n_pad, f_out_pad), jnp.float32),
        grid_spec=pltpu.PrefetchScalarGridSpec(
            num_scalar_prefetch=0,
            grid=(k - 1, n_pad // tm),
            in_specs=[
                pl.BlockSpec(memory_space=pltpu.MemorySpace.SMEM),   # lambda_max (1,)
                pl.BlockSpec(memory_space=pltpu.MemorySpace.VMEM),   # X_0, resident
                pl.BlockSpec(memory_space=pltpu.MemorySpace.VMEM),   # D^-1/2, resident
                a_spec,                                              # A^T (int8)
                pl.BlockSpec(memory_space=pltpu.MemorySpace.VMEM),   # W [k, F_in, F_out_pad]
                pl.BlockSpec(memory_space=pltpu.MemorySpace.VMEM),   # bias
            ],
            out_specs=pl.BlockSpec((tm, f_out_pad), lambda s, i: (i, 0)),
            scratch_shapes=[
                pltpu.VMEM((k, n_pad, f_in), jnp.float32),    # X_0 .. X_{k-1}
                pltpu.VMEM((n_pad, f_in), jnp.bfloat16),      # bf16 (D^-1/2 X_s), per level
            ],
        ),
        compiler_params=pltpu.CompilerParams(
            # Level axis carries scratch state; the row-tile axis refreshes the level
            # cache at i == 0, so neither axis may be split across cores.
            # TODO(synk): v7x dual-TC split of the row-tile axis (core_map + shared X_s).
            dimension_semantics=("arbitrary", "arbitrary"),
            vmem_limit_bytes=vmem_limit,
        ),
    )(lam, x_pad, d_pad, a_pad, w3, b_pad)

    return out_pad[:n, :f_out]


def cheb_conv_reference(adj, signal, weight, bias, k, lambda_max=None):
    """Pure-JAX f32 reference mirroring the PyTorch/DGL forward."""
    if lambda_max is None:
        lambda_max = jnp.array([2.0], dtype=jnp.float32)
    re_norm = 2.0 / jnp.asarray(lambda_max, jnp.float32).reshape(-1)[0]

    adj_f32 = adj.astype(jnp.float32)
    in_deg = jnp.sum(adj_f32, axis=0)
    d = jnp.power(jnp.maximum(in_deg, 1.0), -0.5)[:, None]

    def unn_lap(feat):
        return (adj_f32.T @ (feat * d)) * d

    X0 = signal.astype(jnp.float32)
    xs = [X0]
    if k > 1:
        X1 = -re_norm * unn_lap(X0) + X0 * (re_norm - 1.0)
        xs.append(X1)
        for _ in range(2, k):
            Xi = -2.0 * re_norm * unn_lap(X1) + X1 * 2.0 * (re_norm - 1.0) - X0
            xs.append(Xi)
            X1, X0 = Xi, X1
    Xt = jnp.concatenate(xs, axis=1)
    b = jnp.asarray(bias, jnp.float32).reshape(1, -1)
    return jnp.maximum(Xt @ weight + b, 0.0)


if __name__ == "__main__":
    # Small deterministic problem: N nodes, F_in -> F_out, Chebyshev order K.
    # N=256 with tm=128 gives grid (K-1, 2) = (2, 2): exercises the row tiling,
    # the per-level state refresh and the gated final-level output path.
    N, IN_FEATS, OUT_FEATS, K = 256, 4, 8, 3

    key = jax.random.PRNGKey(0)
    k_adj, k_sig, k_w, k_b = jax.random.split(key, 4)

    # Symmetric 0/1 adjacency without self loops (dense undirected graph).
    upper = (jax.random.uniform(k_adj, (N, N)) > 0.6).astype(jnp.float32)
    upper = jnp.triu(upper, k=1)
    adj = upper + upper.T                                          # [N, N]

    signal = jax.random.normal(k_sig, (N, IN_FEATS), dtype=jnp.float32)

    # nn.Linear(k*in_feats, out_feats) parameters (weight stored input-major).
    fan_in = K * IN_FEATS
    bound = 1.0 / math.sqrt(fan_in)
    weight = jax.random.uniform(k_w, (fan_in, OUT_FEATS), jnp.float32, -bound, bound)
    bias = jax.random.uniform(k_b, (1, OUT_FEATS), jnp.float32, -bound, bound)

    # User-supplied lambda_max (!= 2 so the (re_norm - 1) terms are exercised; the
    # module's eigen-solve fallback of 2.0 also works via lambda_max=None).
    lambda_max = jnp.array([1.5], dtype=jnp.float32)

    ref = cheb_conv_reference(adj, signal, weight, bias, K, lambda_max)
    scale = float(jnp.max(jnp.abs(ref)))
    # bf16 operands in the A^T @ (D^-1/2 X_s) matmuls (f32 accumulation / recursion
    # state) cause a small, expected drift vs the all-f32 reference.
    tol = 2e-2 * scale + 2e-3

    # 1) default path: VMEM-resident int8 A^T (fits easily at N=256).
    out_res = jax.block_until_ready(
        cheb_conv(adj, signal, weight, bias, K, lambda_max, tm=128))
    assert out_res.shape == (N, OUT_FEATS)
    err = float(jnp.max(jnp.abs(out_res - ref)))
    assert err <= tol, f"resident-A mismatch vs JAX reference: err={err}, scale={scale}"

    # 2) streamed-A fallback path (what very large N uses).
    out_str = jax.block_until_ready(
        cheb_conv(adj, signal, weight, bias, K, lambda_max, tm=128, a_resident=False))
    err = float(jnp.max(jnp.abs(out_str - ref)))
    assert err <= tol, f"streamed-A mismatch vs JAX reference: err={err}, scale={scale}"

    # 3) k == 1 degenerate path (pure linear + ReLU, no adjacency read).
    w1 = weight[:IN_FEATS]
    out_k1 = jax.block_until_ready(cheb_conv(adj, signal, w1, bias, 1, lambda_max))
    ref_k1 = cheb_conv_reference(adj, signal, w1, bias, 1, lambda_max)
    err = float(jnp.max(jnp.abs(out_k1 - ref_k1)))
    assert err <= 1e-4 * (1.0 + float(jnp.max(jnp.abs(ref_k1)))), f"k=1 mismatch: err={err}"

    print("KERNEL_OK")
</pallas_src>

<mosaic_0001>
module attributes {stable_mosaic.version = 11 : i64} {
  func.func @_cheb_conv_kernel(%arg0: i32, %arg1: i32, %arg2: memref<1xf32, #tpu.memory_space<smem>>, %arg3: memref<256x4xf32, #tpu.memory_space<vmem>>, %arg4: memref<256x1xf32, #tpu.memory_space<vmem>>, %arg5: memref<256x256xi8, #tpu.memory_space<vmem>>, %arg6: memref<3x4x128xf32, #tpu.memory_space<vmem>>, %arg7: memref<1x128xf32, #tpu.memory_space<vmem>>, %arg8: memref<128x128xf32, #tpu.memory_space<vmem>>, %arg9: memref<3x256x4xf32, #tpu.memory_space<vmem>>, %arg10: memref<256x4xbf16, #tpu.memory_space<vmem>>) attributes {dimension_semantics = [#tpu.dimension_semantics<arbitrary>, #tpu.dimension_semantics<arbitrary>], iteration_bounds = array<i64: 2, 2>, scalar_prefetch = 0 : i64, scratch_operands = 2 : i64, tpu.core_type = #tpu.core_type<tc>, window_params = [{transform_indices = @transform_0, window_bounds = array<i64: 1>}, {pipeline_mode = #tpu.pipeline_mode<synchronous>, transform_indices = @transform_1, window_bounds = array<i64: 256, 4>}, {pipeline_mode = #tpu.pipeline_mode<synchronous>, transform_indices = @transform_2, window_bounds = array<i64: 256, 1>}, {pipeline_mode = #tpu.pipeline_mode<synchronous>, transform_indices = @transform_3, window_bounds = array<i64: 256, 256>}, {pipeline_mode = #tpu.pipeline_mode<synchronous>, transform_indices = @transform_4, window_bounds = array<i64: 3, 4, 128>}, {pipeline_mode = #tpu.pipeline_mode<synchronous>, transform_indices = @transform_5, window_bounds = array<i64: 1, 128>}, {transform_indices = @transform_6, window_bounds = array<i64: 128, 128>}]} {
    %c128_i32 = arith.constant 128 : i32
    %0 = arith.muli %arg1, %c128_i32 : i32
    %1 = tpu.assume_multiple %0, 128 : i32
    %c0 = arith.constant 0 : index
    %2 = memref.load %arg2[%c0] : memref<1xf32, #tpu.memory_space<smem>>
    %cst = arith.constant 2.000000e+00 : f32
    %3 = arith.divf %cst, %2 : f32
    %4 = arith.index_cast %1 : i32 to index
    %c0_0 = arith.constant 0 : index
    %5 = vector.load %arg4[%4, %c0_0] : memref<256x1xf32, #tpu.memory_space<vmem>>, vector<128x1xf32>
    %c0_i32 = arith.constant 0 : i32
    %6 = arith.cmpi eq, %arg1, %c0_i32 : i32
    %7 = arith.extui %6 : i1 to i32
    %c0_i32_1 = arith.constant 0 : i32
    %8 = arith.cmpi ne, %7, %c0_i32_1 : i32
    scf.if %8 {
      %c0_i32_21 = arith.constant 0 : i32
      %52 = arith.cmpi eq, %arg0, %c0_i32_21 : i32
      %53 = arith.extui %52 : i1 to i32
      %c0_i32_22 = arith.constant 0 : i32
      %54 = arith.cmpi ne, %53, %c0_i32_22 : i32
      scf.if %54 {
        %c0_25 = arith.constant 0 : index
        %c0_26 = arith.constant 0 : index
        %58 = vector.load %arg3[%c0_25, %c0_26] : memref<256x4xf32, #tpu.memory_space<vmem>>, vector<256x4xf32>
        %c0_27 = arith.constant 0 : index
        %c0_28 = arith.constant 0 : index
        %c0_29 = arith.constant 0 : index
        %59 = vector.load %arg9[%c0_27, %c0_28, %c0_29] : memref<3x256x4xf32, #tpu.memory_space<vmem>>, vector<1x256x4xf32>
        %60 = vector.shape_cast %59 : vector<1x256x4xf32> to vector<256x4xf32>
        %61 = vector.shape_cast %58 : vector<256x4xf32> to vector<1x256x4xf32>
        tpu.vector_store %arg9[%c0_27, %c0_28, %c0_29], %61 {strides = array<i32>} : memref<3x256x4xf32, #tpu.memory_space<vmem>>, vector<1x256x4xf32>,
        %c0_30 = arith.constant 0 : index
        %c0_31 = arith.constant 0 : index
        %62 = vector.load %arg4[%c0_30, %c0_31] : memref<256x1xf32, #tpu.memory_space<vmem>>, vector<256x1xf32>
        %63 = vector.broadcast %62 : vector<256x1xf32> to vector<256x4xf32>
        %64 = arith.mulf %63, %58 : vector<256x4xf32>
        %65 = arith.truncf %64 : vector<256x4xf32> to vector<256x4xbf16>
        %c0_32 = arith.constant 0 : index
        %c0_33 = arith.constant 0 : index
        %66 = vector.load %arg10[%c0_32, %c0_33] : memref<256x4xbf16, #tpu.memory_space<vmem>>, vector<256x4xbf16>
        tpu.vector_store %arg10[%c0_32, %c0_33], %65 {strides = array<i32>} : memref<256x4xbf16, #tpu.memory_space<vmem>>, vector<256x4xbf16>,
      } else {
      }
      %c0_i32_23 = arith.constant 0 : i32
      %55 = arith.cmpi sgt, %arg0, %c0_i32_23 : i32
      %56 = arith.extui %55 : i1 to i32
      %c0_i32_24 = arith.constant 0 : i32
      %57 = arith.cmpi ne, %56, %c0_i32_24 : i32
      scf.if %57 {
        %c0_25 = arith.constant 0 : index
        %c0_26 = arith.constant 0 : index
        %58 = vector.load %arg4[%c0_25, %c0_26] : memref<256x1xf32, #tpu.memory_space<vmem>>, vector<256x1xf32>
        %59 = arith.index_cast %arg0 : i32 to index
        %c0_27 = arith.constant 0 : index
        %c0_28 = arith.constant 0 : index
        %60 = vector.load %arg9[%59, %c0_27, %c0_28] : memref<3x256x4xf32, #tpu.memory_space<vmem>>, vector<1x256x4xf32>
        %61 = vector.shape_cast %60 : vector<1x256x4xf32> to vector<256x4xf32>
        %62 = vector.broadcast %58 : vector<256x1xf32> to vector<256x4xf32>
        %63 = arith.mulf %62, %61 : vector<256x4xf32>
        %64 = arith.truncf %63 : vector<256x4xf32> to vector<256x4xbf16>
        %c0_29 = arith.constant 0 : index
        %c0_30 = arith.constant 0 : index
        %65 = vector.load %arg10[%c0_29, %c0_30] : memref<256x4xbf16, #tpu.memory_space<vmem>>, vector<256x4xbf16>
        tpu.vector_store %arg10[%c0_29, %c0_30], %64 {strides = array<i32>} : memref<256x4xbf16, #tpu.memory_space<vmem>>, vector<256x4xbf16>,
      } else {
      }
    } else {
    }
    %9 = arith.index_cast %1 : i32 to index
    %c0_2 = arith.constant 0 : index
    %10 = vector.load %arg5[%9, %c0_2] : memref<256x256xi8, #tpu.memory_space<vmem>>, vector<128x256xi8>
    %11 = arith.sitofp %10 : vector<128x256xi8> to vector<128x256xbf16>
    %c0_3 = arith.constant 0 : index
    %c0_4 = arith.constant 0 : index
    %12 = vector.load %arg10[%c0_3, %c0_4] : memref<256x4xbf16, #tpu.memory_space<vmem>>, vector<256x4xbf16>
    %cst_5 = arith.constant dense<0.000000e+00> : vector<128x4xf32>
    %13 = tpu.matmul %11, %12, %cst_5 {dimension_numbers = #tpu.dot_dimension_numbers<[1], [0], [0], [1], [0, 0, 1, 1], [], []>} : vector<128x256xbf16>, vector<256x4xbf16>, vector<128x4xf32> -> vector<128x4xf32>
    %14 = vector.broadcast %5 : vector<128x1xf32> to vector<128x4xf32>
    %15 = arith.mulf %14, %13 : vector<128x4xf32>
    %16 = arith.index_cast %arg0 : i32 to index
    %17 = arith.index_cast %1 : i32 to index
    %c0_6 = arith.constant 0 : index
    %18 = vector.load %arg9[%16, %17, %c0_6] : memref<3x256x4xf32, #tpu.memory_space<vmem>>, vector<1x128x4xf32>
    %19 = vector.shape_cast %18 : vector<1x128x4xf32> to vector<128x4xf32>
    %c1_i32 = arith.constant 1 : i32
    %20 = arith.subi %arg0, %c1_i32 : i32
    %c0_i32_7 = arith.constant 0 : i32
    %21 = arith.maxsi %20, %c0_i32_7 : i32
    %22 = arith.index_cast %21 : i32 to index
    %23 = arith.index_cast %1 : i32 to index
    %c0_8 = arith.constant 0 : index
    %24 = vector.load %arg9[%22, %23, %c0_8] : memref<3x256x4xf32, #tpu.memory_space<vmem>>, vector<1x128x4xf32>
    %25 = vector.shape_cast %24 : vector<1x128x4xf32> to vector<128x4xf32>
    %c0_i32_9 = arith.constant 0 : i32
    %26 = arith.cmpi eq, %arg0, %c0_i32_9 : i32
    %cst_10 = arith.constant 0.000000e+00 : f32
    %27 = arith.subf %cst_10, %3 : f32
    %cst_11 = arith.constant -2.000000e+00 : f32
    %28 = arith.mulf %cst_11, %3 : f32
    %29 = arith.select %26, %27, %28 : f32
    %cst_12 = arith.constant 1.000000e+00 : f32
    %30 = arith.subf %3, %cst_12 : f32
    %cst_13 = arith.constant 1.000000e+00 : f32
    %31 = arith.subf %3, %cst_13 : f32
    %cst_14 = arith.constant 2.000000e+00 : f32
    %32 = arith.mulf %cst_14, %31 : f32
    %33 = arith.select %26, %30, %32 : f32
    %cst_15 = arith.constant 0.000000e+00 : f32
    %cst_16 = arith.constant 1.000000e+00 : f32
    %34 = arith.select %26, %cst_15, %cst_16 : f32
    %35 = vector.broadcast %29 : f32 to vector<128x4xf32>
    %36 = arith.mulf %35, %15 : vector<128x4xf32>
    %37 = vector.broadcast %33 : f32 to vector<128x4xf32>
    %38 = arith.mulf %37, %19 : vector<128x4xf32>
    %39 = arith.addf %36, %38 : vector<128x4xf32>
    %40 = vector.broadcast %34 : f32 to vector<128x4xf32>
    %41 = arith.mulf %40, %25 : vector<128x4xf32>
    %42 = arith.subf %39, %41 : vector<128x4xf32>
    %c1_i32_17 = arith.constant 1 : i32
    %43 = arith.addi %arg0, %c1_i32_17 : i32
    %44 = arith.index_cast %43 : i32 to index
    %45 = arith.index_cast %1 : i32 to index
    %c0_18 = arith.constant 0 : index
    %46 = vector.load %arg9[%44, %45, %c0_18] : memref<3x256x4xf32, #tpu.memory_space<vmem>>, vector<1x128x4xf32>
    %47 = vector.shape_cast %46 : vector<1x128x4xf32> to vector<128x4xf32>
    %48 = vector.shape_cast %42 : vector<128x4xf32> to vector<1x128x4xf32>
    tpu.vector_store %arg9[%44, %45, %c0_18], %48 {strides = array<i32>} : memref<3x256x4xf32, #tpu.memory_space<vmem>>, vector<1x128x4xf32>,
    %c1_i32_19 = arith.constant 1 : i32
    %49 = arith.cmpi eq, %arg0, %c1_i32_19 : i32
    %50 = arith.extui %49 : i1 to i32
    %c0_i32_20 = arith.constant 0 : i32
    %51 = arith.cmpi ne, %50, %c0_i32_20 : i32
    scf.if %51 {
      %c0_21 = arith.constant 0 : index
      %c0_22 = arith.constant 0 : index
      %52 = vector.load %arg7[%c0_21, %c0_22] : memref<1x128xf32, #tpu.memory_space<vmem>>, vector<1x128xf32>
      %c2 = arith.constant 2 : index
      %c0_23 = arith.constant 0 : index
      %c0_24 = arith.constant 0 : index
      %53 = vector.load %arg6[%c2, %c0_23, %c0_24] : memref<3x4x128xf32, #tpu.memory_space<vmem>>, vector<1x4x128xf32>
      %54 = vector.shape_cast %53 : vector<1x4x128xf32> to vector<4x128xf32>
      %cst_25 = arith.constant dense<0.000000e+00> : vector<128x128xf32>
      %55 = tpu.matmul %42, %54, %cst_25 {dimension_numbers = #tpu.dot_dimension_numbers<[1], [0], [0], [1], [0, 0, 1, 1], [], []>} : vector<128x4xf32>, vector<4x128xf32>, vector<128x128xf32> -> vector<128x128xf32>
      %56 = vector.broadcast %52 : vector<1x128xf32> to vector<128x128xf32>
      %57 = arith.addf %56, %55 : vector<128x128xf32>
      %c0_26 = arith.constant 0 : index
      %58 = arith.index_cast %1 : i32 to index
      %c0_27 = arith.constant 0 : index
      %59 = vector.load %arg9[%c0_26, %58, %c0_27] : memref<3x256x4xf32, #tpu.memory_space<vmem>>, vector<1x128x4xf32>
      %60 = vector.shape_cast %59 : vector<1x128x4xf32> to vector<128x4xf32>
      %c0_28 = arith.constant 0 : index
      %c0_29 = arith.constant 0 : index
      %c0_30 = arith.constant 0 : index
      %61 = vector.load %arg6[%c0_28, %c0_29, %c0_30] : memref<3x4x128xf32, #tpu.memory_space<vmem>>, vector<1x4x128xf32>
      %62 = vector.shape_cast %61 : vector<1x4x128xf32> to vector<4x128xf32>
      %cst_31 = arith.constant dense<0.000000e+00> : vector<128x128xf32>
      %63 = tpu.matmul %60, %62, %cst_31 {dimension_numbers = #tpu.dot_dimension_numbers<[1], [0], [0], [1], [0, 0, 1, 1], [], []>} : vector<128x4xf32>, vector<4x128xf32>, vector<128x128xf32> -> vector<128x128xf32>
      %64 = arith.addf %57, %63 : vector<128x128xf32>
      %c1 = arith.constant 1 : index
      %65 = arith.index_cast %1 : i32 to index
      %c0_32 = arith.constant 0 : index
      %66 = vector.load %arg9[%c1, %65, %c0_32] : memref<3x256x4xf32, #tpu.memory_space<vmem>>, vector<1x128x4xf32>
      %67 = vector.shape_cast %66 : vector<1x128x4xf32> to vector<128x4xf32>
      %c1_33 = arith.constant 1 : index
      %c0_34 = arith.constant 0 : index
      %c0_35 = arith.constant 0 : index
      %68 = vector.load %arg6[%c1_33, %c0_34, %c0_35] : memref<3x4x128xf32, #tpu.memory_space<vmem>>, vector<1x4x128xf32>
      %69 = vector.shape_cast %68 : vector<1x4x128xf32> to vector<4x128xf32>
      %cst_36 = arith.constant dense<0.000000e+00> : vector<128x128xf32>
      %70 = tpu.matmul %67, %69, %cst_36 {dimension_numbers = #tpu.dot_dimension_numbers<[1], [0], [0], [1], [0, 0, 1, 1], [], []>} : vector<128x4xf32>, vector<4x128xf32>, vector<128x128xf32> -> vector<128x128xf32>
      %71 = arith.addf %64, %70 : vector<128x128xf32>
      %cst_37 = arith.constant 0.000000e+00 : f32
      %72 = vector.broadcast %cst_37 : f32 to vector<128x128xf32>
      %73 = arith.maximumf %71, %72 : vector<128x128xf32>
      %c0_38 = arith.constant 0 : index
      %c0_39 = arith.constant 0 : index
      %74 = vector.load %arg8[%c0_38, %c0_39] : memref<128x128xf32, #tpu.memory_space<vmem>>, vector<128x128xf32>
      tpu.vector_store %arg8[%c0_38, %c0_39], %73 {strides = array<i32>} : memref<128x128xf32, #tpu.memory_space<vmem>>, vector<128x128xf32>,
    } else {
    }
    return
  }
  func.func @transform_0(%arg0: i32, %arg1: i32) -> i32 {
    %c0_i32 = arith.constant 0 : i32
    %c0_i32_0 = arith.constant 0 : i32
    return %c0_i32 : i32
  }
  func.func @transform_1(%arg0: i32, %arg1: i32) -> (i32, i32) {
    %c0_i32 = arith.constant 0 : i32
    %c0_i32_0 = arith.constant 0 : i32
    %c0_i32_1 = arith.constant 0 : i32
    return %c0_i32, %c0_i32_0 : i32, i32
  }
  func.func @transform_2(%arg0: i32, %arg1: i32) -> (i32, i32) {
    %c0_i32 = arith.constant 0 : i32
    %c0_i32_0 = arith.constant 0 : i32
    %c0_i32_1 = arith.constant 0 : i32
    return %c0_i32, %c0_i32_0 : i32, i32
  }
  func.func @transform_3(%arg0: i32, %arg1: i32) -> (i32, i32) {
    %c0_i32 = arith.constant 0 : i32
    %c0_i32_0 = arith.constant 0 : i32
    %c0_i32_1 = arith.constant 0 : i32
    return %c0_i32, %c0_i32_0 : i32, i32
  }
  func.func @transform_4(%arg0: i32, %arg1: i32) -> (i32, i32, i32) {
    %c0_i32 = arith.constant 0 : i32
    %c0_i32_0 = arith.constant 0 : i32
    %c0_i32_1 = arith.constant 0 : i32
    %c0_i32_2 = arith.constant 0 : i32
    return %c0_i32, %c0_i32_0, %c0_i32_1 : i32, i32, i32
  }
  func.func @transform_5(%arg0: i32, %arg1: i32) -> (i32, i32) {
    %c0_i32 = arith.constant 0 : i32
    %c0_i32_0 = arith.constant 0 : i32
    %c0_i32_1 = arith.constant 0 : i32
    return %c0_i32, %c0_i32_0 : i32, i32
  }
  func.func @transform_6(%arg0: i32, %arg1: i32) -> (i32, i32) {
    %c0_i32 = arith.constant 0 : i32
    %c0_i32_0 = arith.constant 0 : i32
    return %arg1, %c0_i32 : i32, i32
  }
}

</mosaic_0001>

<bundles_post_ra>
// kernel: tpu_custom_call.1
= control target key start
LH: loop header
LB: loop body
LE: loop exit
PB: predicated region body
PF: predicated region fallthrough
CT: control target
= control target key end

     0   :  { %s4308_s0 = inlined_call_operand.<no memory space> [shape: f32[1], index: 0, kind: input, shape index: {}]   ;;  %s4309_s1 = inlined_call_operand.vmem [shape: f32[256,4], index: 1, kind: input, shape index: {}]   ;;  %s4310_s2 = inlined_call_operand.vmem [shape: f32[256,1], index: 2, kind: input, shape index: {}]   ;;  %s4311_s3 = inlined_call_operand.vmem [shape: s8[256,256], index: 3, kind: input, shape index: {}]   ;;  %s4312_s4 = inlined_call_operand.vmem [shape: f32[3,4,128], index: 4, kind: input, shape index: {}]   ;;  %s4313_s5 = inlined_call_operand.vmem [shape: f32[1,128], index: 5, kind: input, shape index: {}]   ;;  %s4314_s6 = inlined_call_operand.hbm [shape: f32[256,128], index: 6, kind: output, shape index: {}]  }
   0x1   :  { %4316 = sst [smem:[#allocation9_spill]] %s4309_s1 }
   0x2   :  { %11 = sst [smem:[#allocation4]] %s4308_s0 }
   0x3   :  { %12 = vsyncpa [#allocation6], 0 }
   0x4   :  { %14 = vsyncpa [#allocation6 + $0x1], 0  ;;  %s3179_s23 = smov 0   ;;  %s3181_s24 = smov 0  }
   0x5   :  { %s3183_s25 = smov 0   ;;  %s3185_s26 = smov 0  }
   0x6   :  { %s3187_s27 = smov 0   ;;  %s3189_s28 = smov 0  }
   0x7   :  { %s3191_s29 = smov 0   ;;  %s3193_s30 = smov 0  }
   0x8 LB: > { %s2471_s0 = sadd.s32 4294967295, %s3133_s30   ;;  %s2472_s7 = sadd.s32 4294967294, %s3133_s30   ;;  %s3133_s30 = sphi %s3193_s30, %s20_s30   ;;  %s3129_s29 = sphi %s3191_s29, %s4329_s29   ;;  %s3125_s28 = sphi %s3189_s28, %s4328_s28   ;;  %s3121_s27 = sphi %s3187_s27, %s4327_s27   ;;  %s3117_s26 = sphi %s3185_s26, %s4326_s26   ;;  %s3113_s25 = sphi %s3183_s25, %s4325_s25   ;;  %s3109_s24 = sphi %s3181_s24, %s4324_s24   ;;  %s3105_s23 = sphi %s3179_s23, %s4323_s23  }
   0x9   : > { %s29_s8 = sadd.s32 1, %s3125_s28  ;;  %s32_s9 = sadd.s32 1, %s3129_s29 }
   0xa   : > { %p30_p0 = scmp.ge.s32.totalorder %s29_s8, 2  ;;  %s165_s10 = sadd.s32 1, %s3113_s25 }
   0xb   : > { %p175_p1 = scmp.ne.s32.totalorder %s3113_s25, %s3109_s24  ;;  %p176_p2 = scmp.eq.s32.totalorder %s2471_s0, 3 }
   0xc   : > { %s4331_s8 = smov (%p30_p0, %s29_s8), 0  ;;  %s4333_s9 = smov (!%p30_p0, %s32_s9), %s3129_s29 }
   0xd   : > { %s162_s11 = ssub.s32 %s3125_s28, %s4331_s8  ;;  %p3231_p3 = por %p176_p2, %p175_p1 }
   0xe   : > { %p34_p4 = scmp.ge.s32.totalorder %s4333_s9, 2  ;;  %p163_p5 = scmp.eq.s32.totalorder %s162_s11, 0 }
   0xf   : > { %p181_p6 = scmp.ne.s32.totalorder %s3109_s24, %s3105_s23  ;;  %p182_p7 = scmp.eq.s32.totalorder %s2472_s7, 3 }
  0x10   : > { %s4335_s9 = smov (%p34_p4, %s4333_s9), 0  ;;  %p2474_p9 = scmp.ge.s32.totalorder %s3133_s30, 1 }
  0x11   : > { %4318 = sst [smem:[#allocation8_spill]] %s4335_s9  ;;  %p3242_p8 = por %p182_p7, %p181_p6 }
  0x12   : > { %s3240_s13 = scalar_select %p163_p5, %s3113_s25, %s165_s10  }
  0x13   : > { %p218_p10 = scmp.lt.s32.totalorder %s3133_s30, 5 }
  0x15   : > { %p219_p11 = pnand %p2474_p9, %p218_p10 }
  0x16   : > { %s4315_s15 = sand.u32 (!%p219_p11), 1, %s3109_s24   ;;  %s3250_s16 = sshll.u32 (!%p219_p11), %s3117_s26, 7 }
  0x17   : > { %222 = sbr.rel (%p219_p11) target bundleno = 1037 (0x40d), region = 44  ;;  %s2475_s17 = sshll.u32 (!%p219_p11), %s4315_s15, 7 }
  0x18   : > { %s246_s18 = sld [smem:[#allocation4]] (!%p219_p11)  ;;  %s251_s21 = scalar_lea.vmem (!%p219_p11), %s4310_s2, %s3250_s16 }
  0x19   : > { %s3292_s7 = scalar_lea.vmem (!%p219_p11), [#allocation5], %s2475_s17  ;;  %p2477_p12 = scmp.ne.s32.totalorder (!%p219_p11), %s3117_s26, 0 }
  0x1c   : > { %v3258_v0 = vld [vmem:[%s251_s21] sm:$0xff]  ;;  %v3260_v1 = vld [vmem:[%s251_s21 + $0x8] sm:$0xff]  ;;  %v3262_v2 = vld [vmem:[%s251_s21 + $0x10] sm:$0xff]  ;;  %p2478_p13 = scmp.ne.s32.totalorder (!%p2477_p12), %s3121_s27, 0 }
  0x1d   : > { %v3264_v3 = vld [vmem:[%s251_s21 + $0x18] sm:$0xff]  ;;  %v3266_v4 = vld [vmem:[%s251_s21 + $0x20] sm:$0xff]  ;;  %v3268_v5 = vld [vmem:[%s251_s21 + $0x28] sm:$0xff] }
  0x1e   : > { %v3270_v6 = vld [vmem:[%s251_s21 + $0x30] sm:$0xff]  ;;  %v3272_v7 = vld [vmem:[%s251_s21 + $0x38] sm:$0xff]  ;;  %v3274_v8 = vld [vmem:[%s251_s21 + $0x40] sm:$0xff]  ;;  %v247_v12 = vstv %s246_s18 }
  0x1f   : > { %v3276_v9 = vld [vmem:[%s251_s21 + $0x48] sm:$0xff]  ;;  %v3278_v10 = vld [vmem:[%s251_s21 + $0x50] sm:$0xff]  ;;  %v3280_v11 = vld [vmem:[%s251_s21 + $0x58] sm:$0xff]  ;;  %3017 = vrcp.f32 %v247_v12 }
  0x20   : > { %v3282_v13 = vld [vmem:[%s251_s21 + $0x60] sm:$0xff]  ;;  %v3284_v14 = vld [vmem:[%s251_s21 + $0x68] sm:$0xff]  ;;  %v3286_v15 = vld [vmem:[%s251_s21 + $0x70] sm:$0xff] }
  0x21   : > { %v3288_v16 = vld [vmem:[%s251_s21 + $0x78] sm:$0xff] }
  0x2c   : > { %v3018_v17 = vpop.eup %3017 }
  0x2d   : > { %2939 = vpush %v3018_v17 }
  0x5b   : > { %271 = sbr.rel (%p2477_p12) target bundleno = 490 (0x1ea), region = 48 }
  0x5e   : > { %s2940_s22 = spop %2939 }
  0x5f   : > { %s3290_s0 = smul.f32 2.0, %s2940_s22 }
  0x60   : > { %275 = sbr.rel (%p2478_p13) target bundleno = 292 (0x124), region = 52  ;;  %s4320_s1 = sld [smem:[#allocation9_spill]] (!%p2478_p13) }
  0x65   : > { %v343_v18 = vld [vmem:[%s4310_s2 + $0x10] sm:$0xff]  ;;  %v341_v19 = vld [vmem:[%s4310_s2] sm:$0xff]  ;;  %v3135_v20 = vmov 0   ;;  %v344_v21 = vld [vmem:[%s4310_s2 + $0x18] sm:$0xff]  ;;  %vm308_vm0 = vcmask 31744   ;;  %vm693_vm1 = vcmask 27648  }
  0x66   : > { %3020 = vset.pattern.permute.xlu1 %v3135_v20  ;;  %3019 = vset.pattern.permute.xlu0 %v3135_v20  ;;  %v342_v22 = vld [vmem:[%s4310_s2 + $0x8] sm:$0xff]  ;;  %v345_v24 = vld [vmem:[%s4310_s2 + $0x20] sm:$0xff]  ;;  %v348_v25 = vld [vmem:[%s4310_s2 + $0x38] sm:$0xff] }
  0x67   : > { %385 = vperm.xlu1 %3020, %v343_v18   ;;  %375 = vperm.xlu0 %3019, %v341_v19   ;;  %v346_v23 = vld [vmem:[%s4310_s2 + $0x28] sm:$0xff]  ;;  %v347_v26 = vld [vmem:[%s4310_s2 + $0x30] sm:$0xff]  ;;  %v3330_v28 = vld [vmem:[%s4320_s1] sm:$0xff] }
  0x68   : > { %v3323_v27 = vld [vmem:[%s4320_s1 + $0x10] sm:$0xff]  ;;  %v3335_v29 = vld [vmem:[%s4320_s1 + $0x18] sm:$0xff]  ;;  %v3340_v30 = vld [vmem:[%s4320_s1 + $0x8] sm:$0xff]  ;;  %309 = vst.msk [vmem:[#allocation2] sm:$0xff] %vm308_vm0, %v3330_v28 }
  0x69   : > { %311 = vst.msk [vmem:[#allocation2 + $0x10] sm:$0xff] %vm308_vm0, %v3323_v27  ;;  %312 = vst.msk [vmem:[#allocation2 + $0x18] sm:$0xff] %vm308_vm0, %v3335_v29  ;;  %v3351_v31 = vld [vmem:[%s4320_s1 + $0x28] sm:$0xff]  ;;  %v3356_v32 = vld [vmem:[%s4320_s1 + $0x20] sm:$0xff] }
  0x6a   : > { %310 = vst.msk [vmem:[#allocation2 + $0x8] sm:$0xff] %vm308_vm0, %v3340_v30  ;;  %v3361_v33 = vld [vmem:[%s4320_s1 + $0x38] sm:$0xff]  ;;  %314 = vst.msk [vmem:[#allocation2 + $0x28] sm:$0xff] %vm308_vm0, %v3351_v31  ;;  %v3372_v34 = vld [vmem:[%s4320_s1 + $0x30] sm:$0xff] }
  0x6b   : > { %390 = vperm.xlu1 %3020, %v344_v21   ;;  %380 = vperm.xlu0 %3019, %v342_v22   ;;  %313 = vst.msk [vmem:[#allocation2 + $0x20] sm:$0xff] %vm308_vm0, %v3356_v32  ;;  %316 = vst.msk [vmem:[#allocation2 + $0x38] sm:$0xff] %vm308_vm0, %v3361_v33  ;;  %v3377_v35 = vld [vmem:[%s4320_s1 + $0x48] sm:$0xff]  ;;  %v3382_v36 = vld [vmem:[%s4320_s1 + $0x40] sm:$0xff] }
  0x6c   : > { %315 = vst.msk [vmem:[#allocation2 + $0x30] sm:$0xff] %vm308_vm0, %v3372_v34  ;;  %318 = vst.msk [vmem:[#allocation2 + $0x48] sm:$0xff] %vm308_vm0, %v3377_v35  ;;  %v350_v37 = vld [vmem:[%s4310_s2 + $0x48] sm:$0xff]  ;;  %v349_v38 = vld [vmem:[%s4310_s2 + $0x40] sm:$0xff] }
  0x6d   : > { %317 = vst.msk [vmem:[#allocation2 + $0x40] sm:$0xff] %vm308_vm0, %v3382_v36  ;;  %v3399_v39 = vld [vmem:[%s4320_s1 + $0x58] sm:$0xff]  ;;  %v3404_v40 = vld [vmem:[%s4320_s1 + $0x50] sm:$0xff]  ;;  %v3419_v43 = vld [vmem:[%s4320_s1 + $0x68] sm:$0xff] }
  0x6e   : > { %320 = vst.msk [vmem:[#allocation2 + $0x58] sm:$0xff] %vm308_vm0, %v3399_v39  ;;  %319 = vst.msk [vmem:[#allocation2 + $0x50] sm:$0xff] %vm308_vm0, %v3404_v40  ;;  %v352_v41 = vld [vmem:[%s4310_s2 + $0x58] sm:$0xff]  ;;  %v351_v42 = vld [vmem:[%s4310_s2 + $0x50] sm:$0xff] }
  0x6f   : > { %400 = vperm.xlu1 %3020, %v346_v23   ;;  %395 = vperm.xlu0 %3019, %v345_v24   ;;  %v3424_v44 = vld [vmem:[%s4320_s1 + $0x60] sm:$0xff]  ;;  %322 = vst.msk [vmem:[#allocation2 + $0x68] sm:$0xff] %vm308_vm0, %v3419_v43  ;;  %v354_v45 = vld [vmem:[%s4310_s2 + $0x68] sm:$0xff]  ;;  %v3439_v47 = vld [vmem:[%s4320_s1 + $0x78] sm:$0xff] }
  0x70   : > { %321 = vst.msk [vmem:[#allocation2 + $0x60] sm:$0xff] %vm308_vm0, %v3424_v44  ;;  %v353_v46 = vld [vmem:[%s4310_s2 + $0x60] sm:$0xff]  ;;  %v3444_v48 = vld [vmem:[%s4320_s1 + $0x70] sm:$0xff]  ;;  %324 = vst.msk [vmem:[#allocation2 + $0x78] sm:$0xff] %vm308_vm0, %v3439_v47 }
  0x71   : > { %323 = vst.msk [vmem:[#allocation2 + $0x70] sm:$0xff] %vm308_vm0, %v3444_v48  ;;  %v356_v49 = vld [vmem:[%s4310_s2 + $0x78] sm:$0xff]  ;;  %v355_v50 = vld [vmem:[%s4310_s2 + $0x70] sm:$0xff]  ;;  %v3459_v51 = vld [vmem:[%s4320_s1 + $0x88] sm:$0xff] }
  0x72   : > { %v3464_v52 = vld [vmem:[%s4320_s1 + $0x80] sm:$0xff]  ;;  %326 = vst.msk [vmem:[#allocation2 + $0x88] sm:$0xff] %vm308_vm0, %v3459_v51  ;;  %v358_v53 = vld [vmem:[%s4310_s2 + $0x88] sm:$0xff]  ;;  %v3479_v55 = vld [vmem:[%s4320_s1 + $0x98] sm:$0xff] }
  0x73   : > { %410 = vperm.xlu1 %3020, %v348_v25   ;;  %405 = vperm.xlu0 %3019, %v347_v26   ;;  %325 = vst.msk [vmem:[#allocation2 + $0x80] sm:$0xff] %vm308_vm0, %v3464_v52  ;;  %v357_v54 = vld [vmem:[%s4310_s2 + $0x80] sm:$0xff]  ;;  %v3484_v56 = vld [vmem:[%s4320_s1 + $0x90] sm:$0xff]  ;;  %328 = vst.msk [vmem:[#allocation2 + $0x98] sm:$0xff] %vm308_vm0, %v3479_v55 }
  0x74   : > { %327 = vst.msk [vmem:[#allocation2 + $0x90] sm:$0xff] %vm308_vm0, %v3484_v56  ;;  %v360_v57 = vld [vmem:[%s4310_s2 + $0x98] sm:$0xff]  ;;  %v359_v58 = vld [vmem:[%s4310_s2 + $0x90] sm:$0xff]  ;;  %v3499_v59 = vld [vmem:[%s4320_s1 + $0xa8] sm:$0xff] }
  0x75   : > { %v3504_v60 = vld [vmem:[%s4320_s1 + $0xa0] sm:$0xff]  ;;  %330 = vst.msk [vmem:[#allocation2 + $0xa8] sm:$0xff] %vm308_vm0, %v3499_v59  ;;  %v362_v61 = vld [vmem:[%s4310_s2 + $0xa8] sm:$0xff]  ;;  %v3519_v63 = vld [vmem:[%s4320_s1 + $0xb8] sm:$0xff] }
  0x76   : > { %329 = vst.msk [vmem:[#allocation2 + $0xa0] sm:$0xff] %vm308_vm0, %v3504_v60  ;;  %v361_v62 = vld [vmem:[%s4310_s2 + $0xa0] sm:$0xff]  ;;  %v3524_v12 = vld [vmem:[%s4320_s1 + $0xb0] sm:$0xff]  ;;  %332 = vst.msk [vmem:[#allocation2 + $0xb8] sm:$0xff] %vm308_vm0, %v3519_v63 }
  0x77   : > { %420 = vperm.xlu1 %3020, %v350_v37   ;;  %415 = vperm.xlu0 %3019, %v349_v38   ;;  %331 = vst.msk [vmem:[#allocation2 + $0xb0] sm:$0xff] %vm308_vm0, %v3524_v12  ;;  %v364_v17 = vld [vmem:[%s4310_s2 + $0xb8] sm:$0xff]  ;;  %v363_v18 = vld [vmem:[%s4310_s2 + $0xb0] sm:$0xff]  ;;  %v3539_v19 = vld [vmem:[%s4320_s1 + $0xc8] sm:$0xff] }
  0x78   : > { %v3544_v20 = vld [vmem:[%s4320_s1 + $0xc0] sm:$0xff]  ;;  %334 = vst.msk [vmem:[#allocation2 + $0xc8] sm:$0xff] %vm308_vm0, %v3539_v19  ;;  %v366_v21 = vld [vmem:[%s4310_s2 + $0xc8] sm:$0xff]  ;;  %v3559_v23 = vld [vmem:[%s4320_s1 + $0xd8] sm:$0xff] }
  0x79   : > { %333 = vst.msk [vmem:[#allocation2 + $0xc0] sm:$0xff] %vm308_vm0, %v3544_v20  ;;  %v365_v22 = vld [vmem:[%s4310_s2 + $0xc0] sm:$0xff]  ;;  %v3564_v24 = vld [vmem:[%s4320_s1 + $0xd0] sm:$0xff]  ;;  %336 = vst.msk [vmem:[#allocation2 + $0xd8] sm:$0xff] %vm308_vm0, %v3559_v23 }
  0x7a   : > { %335 = vst.msk [vmem:[#allocation2 + $0xd0] sm:$0xff] %vm308_vm0, %v3564_v24  ;;  %v368_v25 = vld [vmem:[%s4310_s2 + $0xd8] sm:$0xff]  ;;  %v367_v26 = vld [vmem:[%s4310_s2 + $0xd0] sm:$0xff]  ;;  %v3579_v37 = vld [vmem:[%s4320_s1 + $0xe8] sm:$0xff] }
  0x7b   : > { %430 = vperm.xlu1 %3020, %v352_v41   ;;  %425 = vperm.xlu0 %3019, %v351_v42   ;;  %v3584_v38 = vld [vmem:[%s4320_s1 + $0xe0] sm:$0xff]  ;;  %338 = vst.msk [vmem:[#allocation2 + $0xe8] sm:$0xff] %vm308_vm0, %v3579_v37  ;;  %v370_v41 = vld [vmem:[%s4310_s2 + $0xe8] sm:$0xff] }
  0x7c   : > { %337 = vst.msk [vmem:[#allocation2 + $0xe0] sm:$0xff] %vm308_vm0, %v3584_v38  ;;  %v369_v42 = vld [vmem:[%s4310_s2 + $0xe0] sm:$0xff] }
  0x7f   : > { %440 = vperm.xlu1 %3020, %v354_v45   ;;  %435 = vperm.xlu0 %3019, %v353_v46   ;;  %v3599_v45 = vld [vmem:[%s4320_s1 + $0xf8] sm:$0xff]  ;;  %v3604_v46 = vld [vmem:[%s4320_s1 + $0xf0] sm:$0xff] }
  0x80   : > { %340 = vst.msk [vmem:[#allocation2 + $0xf8] sm:$0xff] %vm308_vm0, %v3599_v45  ;;  %339 = vst.msk [vmem:[#allocation2 + $0xf0] sm:$0xff] %vm308_vm0, %v3604_v46 }
  0x83   : > { %450 = vperm.xlu1 %3020, %v356_v49   ;;  %445 = vperm.xlu0 %3019, %v355_v50   ;;  %v372_v49 = vld [vmem:[%s4310_s2 + $0xf8] sm:$0xff]  ;;  %v371_v50 = vld [vmem:[%s4310_s2 + $0xf0] sm:$0xff] }
  0x87   : > { %460 = vperm.xlu1 %3020, %v358_v53   ;;  %455 = vperm.xlu0 %3019, %v357_v54  }
  0x8b   : > { %470 = vperm.xlu1 %3020, %v360_v57   ;;  %465 = vperm.xlu0 %3019, %v359_v58  }
  0x8f   : > { %480 = vperm.xlu1 %3020, %v362_v61   ;;  %475 = vperm.xlu0 %3019, %v361_v62  }
  0x93   : > { %490 = vperm.xlu1 %3020, %v364_v17   ;;  %485 = vperm.xlu0 %3019, %v363_v18  }
  0x97   : > { %500 = vperm.xlu1 %3020, %v366_v21   ;;  %495 = vperm.xlu0 %3019, %v365_v22  }
  0x9b   : > { %510 = vperm.xlu1 %3020, %v368_v25   ;;  %505 = vperm.xlu0 %3019, %v367_v26  }
  0x9f   : > { %520 = vperm.xlu1 %3020, %v370_v41   ;;  %515 = vperm.xlu0 %3019, %v369_v42  }
  0xa3   : > { %530 = vperm.xlu1 %3020, %v372_v49   ;;  %525 = vperm.xlu0 %3019, %v371_v50  }
  0xe2   : > { %v386_v53 = vpop.permute.xlu1 %385  ;;  %v376_v54 = vpop.permute.xlu0 %375 }
  0xe3   : > { %v535_v57 = vmul.f32 %v386_v53, %v3323_v27  ;;  %v533_v58 = vmul.f32 %v376_v54, %v3330_v28 }
  0xe5   : > { %v2664_v61 = vpack.c.bf16 %v535_v57, %v535_v57  ;;  %v2662_v62 = vpack.c.bf16 %v533_v58, %v533_v58 }
  0xe6   : > { %v391_v17 = vpop.permute.xlu1 %390  ;;  %v381_v18 = vpop.permute.xlu0 %380 }
  0xe7   : > { %696 = vst.msk [vmem:[#allocation3 + $0x8] sm:$0xf] %vm693_vm1, %v2664_v61  ;;  %694 = vst.msk [vmem:[#allocation3] sm:$0xf] %vm693_vm1, %v2662_v62  ;;  %v536_v21 = vmul.f32 %v391_v17, %v3335_v29  ;;  %v534_v22 = vmul.f32 %v381_v18, %v3340_v30 }
  0xe9   : > { %v2665_v25 = vpack.c.bf16 %v536_v21, %v536_v21  ;;  %v2663_v26 = vpack.c.bf16 %v534_v22, %v534_v22 }
  0xea   : > { %v401_v41 = vpop.permute.xlu1 %400  ;;  %v396_v42 = vpop.permute.xlu0 %395 }
  0xeb   : > { %697 = vst.msk [vmem:[#allocation3 + $0xc] sm:$0xf] %vm693_vm1, %v2665_v25  ;;  %695 = vst.msk [vmem:[#allocation3 + $0x4] sm:$0xf] %vm693_vm1, %v2663_v26  ;;  %v538_v27 = vmul.f32 %v401_v41, %v3351_v31  ;;  %v537_v28 = vmul.f32 %v396_v42, %v3356_v32 }
  0xed   : > { %v2667_v49 = vpack.c.bf16 %v538_v27, %v538_v27  ;;  %v2666_v50 = vpack.c.bf16 %v537_v28, %v537_v28 }
  0xee   : > { %v411_v53 = vpop.permute.xlu1 %410  ;;  %v406_v54 = vpop.permute.xlu0 %405 }
  0xef   : > { %699 = vst.msk [vmem:[#allocation3 + $0x14] sm:$0xf] %vm693_vm1, %v2667_v49  ;;  %698 = vst.msk [vmem:[#allocation3 + $0x10] sm:$0xf] %vm693_vm1, %v2666_v50  ;;  %v540_v29 = vmul.f32 %v411_v53, %v3361_v33  ;;  %v539_v30 = vmul.f32 %v406_v54, %v3372_v34 }
  0xf1   : > { %v2669_v57 = vpack.c.bf16 %v540_v29, %v540_v29  ;;  %v2668_v58 = vpack.c.bf16 %v539_v30, %v539_v30 }
  0xf2   : > { %v421_v61 = vpop.permute.xlu1 %420  ;;  %v416_v62 = vpop.permute.xlu0 %415 }
  0xf3   : > { %701 = vst.msk [vmem:[#allocation3 + $0x1c] sm:$0xf] %vm693_vm1, %v2669_v57  ;;  %700 = vst.msk [vmem:[#allocation3 + $0x18] sm:$0xf] %vm693_vm1, %v2668_v58  ;;  %v542_v31 = vmul.f32 %v421_v61, %v3377_v35  ;;  %v541_v32 = vmul.f32 %v416_v62, %v3382_v36 }
  0xf5   : > { %v2671_v17 = vpack.c.bf16 %v542_v31, %v542_v31  ;;  %v2670_v18 = vpack.c.bf16 %v541_v32, %v541_v32 }
  0xf6   : > { %v431_v21 = vpop.permute.xlu1 %430  ;;  %v426_v22 = vpop.permute.xlu0 %425 }
  0xf7   : > { %703 = vst.msk [vmem:[#allocation3 + $0x24] sm:$0xf] %vm693_vm1, %v2671_v17  ;;  %702 = vst.msk [vmem:[#allocation3 + $0x20] sm:$0xf] %vm693_vm1, %v2670_v18  ;;  %v544_v33 = vmul.f32 %v431_v21, %v3399_v39  ;;  %v543_v34 = vmul.f32 %v426_v22, %v3404_v40 }
  0xf9   : > { %v2673_v25 = vpack.c.bf16 %v544_v33, %v544_v33  ;;  %v2672_v26 = vpack.c.bf16 %v543_v34, %v543_v34 }
  0xfa   : > { %v441_v41 = vpop.permute.xlu1 %440  ;;  %v436_v42 = vpop.permute.xlu0 %435 }
  0xfb   : > { %705 = vst.msk [vmem:[#allocation3 + $0x2c] sm:$0xf] %vm693_vm1, %v2673_v25  ;;  %704 = vst.msk [vmem:[#allocation3 + $0x28] sm:$0xf] %vm693_vm1, %v2672_v26  ;;  %v546_v35 = vmul.f32 %v441_v41, %v3419_v43  ;;  %v545_v36 = vmul.f32 %v436_v42, %v3424_v44 }
  0xfd   : > { %v2675_v27 = vpack.c.bf16 %v546_v35, %v546_v35  ;;  %v2674_v28 = vpack.c.bf16 %v545_v36, %v545_v36 }
  0xfe   : > { %v451_v49 = vpop.permute.xlu1 %450  ;;  %v446_v50 = vpop.permute.xlu0 %445 }
  0xff   : > { %707 = vst.msk [vmem:[#allocation3 + $0x34] sm:$0xf] %vm693_vm1, %v2675_v27  ;;  %706 = vst.msk [vmem:[#allocation3 + $0x30] sm:$0xf] %vm693_vm1, %v2674_v28  ;;  %v548_v39 = vmul.f32 %v451_v49, %v3439_v47  ;;  %v547_v40 = vmul.f32 %v446_v50, %v3444_v48 }
 0x101   : > { %v2677_v53 = vpack.c.bf16 %v548_v39, %v548_v39  ;;  %v2676_v54 = vpack.c.bf16 %v547_v40, %v547_v40 }
 0x102   : > { %v461_v29 = vpop.permute.xlu1 %460  ;;  %v456_v30 = vpop.permute.xlu0 %455 }
 0x103   : > { %709 = vst.msk [vmem:[#allocation3 + $0x3c] sm:$0xf] %vm693_vm1, %v2677_v53  ;;  %708 = vst.msk [vmem:[#allocation3 + $0x38] sm:$0xf] %vm693_vm1, %v2676_v54  ;;  %v550_v43 = vmul.f32 %v461_v29, %v3459_v51  ;;  %v549_v44 = vmul.f32 %v456_v30, %v3464_v52 }
 0x105   : > { %v2679_v57 = vpack.c.bf16 %v550_v43, %v550_v43  ;;  %v2678_v58 = vpack.c.bf16 %v549_v44, %v549_v44 }
 0x106   : > { %v471_v61 = vpop.permute.xlu1 %470  ;;  %v466_v62 = vpop.permute.xlu0 %465 }
 0x107   : > { %711 = vst.msk [vmem:[#allocation3 + $0x44] sm:$0xf] %vm693_vm1, %v2679_v57  ;;  %710 = vst.msk [vmem:[#allocation3 + $0x40] sm:$0xf] %vm693_vm1, %v2678_v58  ;;  %v552_v47 = vmul.f32 %v471_v61, %v3479_v55  ;;  %v551_v48 = vmul.f32 %v466_v62, %v3484_v56 }
 0x109   : > { %v2681_v31 = vpack.c.bf16 %v552_v47, %v552_v47  ;;  %v2680_v32 = vpack.c.bf16 %v551_v48, %v551_v48 }
 0x10a   : > { %v481_v17 = vpop.permute.xlu1 %480  ;;  %v476_v18 = vpop.permute.xlu0 %475 }
 0x10b   : > { %713 = vst.msk [vmem:[#allocation3 + $0x4c] sm:$0xf] %vm693_vm1, %v2681_v31  ;;  %712 = vst.msk [vmem:[#allocation3 + $0x48] sm:$0xf] %vm693_vm1, %v2680_v32  ;;  %v554_v51 = vmul.f32 %v481_v17, %v3499_v59  ;;  %v553_v52 = vmul.f32 %v476_v18, %v3504_v60 }
 0x10d   : > { %v2683_v21 = vpack.c.bf16 %v554_v51, %v554_v51  ;;  %v2682_v22 = vpack.c.bf16 %v553_v52, %v553_v52 }
 0x10e   : > { %v491_v33 = vpop.permute.xlu1 %490  ;;  %v486_v34 = vpop.permute.xlu0 %485 }
 0x10f   : > { %715 = vst.msk [vmem:[#allocation3 + $0x54] sm:$0xf] %vm693_vm1, %v2683_v21  ;;  %714 = vst.msk [vmem:[#allocation3 + $0x50] sm:$0xf] %vm693_vm1, %v2682_v22  ;;  %v556_v55 = vmul.f32 %v491_v33, %v3519_v63  ;;  %v555_v56 = vmul.f32 %v486_v34, %v3524_v12 }
 0x111   : > { %v2685_v25 = vpack.c.bf16 %v556_v55, %v556_v55  ;;  %v2684_v26 = vpack.c.bf16 %v555_v56, %v555_v56 }
 0x112   : > { %v501_v41 = vpop.permute.xlu1 %500  ;;  %v496_v42 = vpop.permute.xlu0 %495 }
 0x113   : > { %717 = vst.msk [vmem:[#allocation3 + $0x5c] sm:$0xf] %vm693_vm1, %v2685_v25  ;;  %716 = vst.msk [vmem:[#allocation3 + $0x58] sm:$0xf] %vm693_vm1, %v2684_v26  ;;  %v558_v59 = vmul.f32 %v501_v41, %v3539_v19  ;;  %v557_v60 = vmul.f32 %v496_v42, %v3544_v20 }
 0x115   : > { %v2687_v35 = vpack.c.bf16 %v558_v59, %v558_v59  ;;  %v2686_v36 = vpack.c.bf16 %v557_v60, %v557_v60 }
 0x116   : > { %v511_v27 = vpop.permute.xlu1 %510  ;;  %v506_v28 = vpop.permute.xlu0 %505 }
 0x117   : > { %719 = vst.msk [vmem:[#allocation3 + $0x64] sm:$0xf] %vm693_vm1, %v2687_v35  ;;  %718 = vst.msk [vmem:[#allocation3 + $0x60] sm:$0xf] %vm693_vm1, %v2686_v36  ;;  %v560_v63 = vmul.f32 %v511_v27, %v3559_v23  ;;  %v559_v12 = vmul.f32 %v506_v28, %v3564_v24 }
 0x119   : > { %v2689_v49 = vpack.c.bf16 %v560_v63, %v560_v63  ;;  %v2688_v50 = vpack.c.bf16 %v559_v12, %v559_v12 }
 0x11a   : > { %v521_v39 = vpop.permute.xlu1 %520  ;;  %v516_v40 = vpop.permute.xlu0 %515 }
 0x11b   : > { %721 = vst.msk [vmem:[#allocation3 + $0x6c] sm:$0xf] %vm693_vm1, %v2689_v49  ;;  %720 = vst.msk [vmem:[#allocation3 + $0x68] sm:$0xf] %vm693_vm1, %v2688_v50  ;;  %v562_v19 = vmul.f32 %v521_v39, %v3579_v37  ;;  %v561_v20 = vmul.f32 %v516_v40, %v3584_v38 }
 0x11d   : > { %v2691_v53 = vpack.c.bf16 %v562_v19, %v562_v19  ;;  %v2690_v54 = vpack.c.bf16 %v561_v20, %v561_v20 }
 0x11e   : > { %v531_v29 = vpop.permute.xlu1 %530  ;;  %v526_v30 = vpop.permute.xlu0 %525 }
 0x11f   : > { %723 = vst.msk [vmem:[#allocation3 + $0x74] sm:$0xf] %vm693_vm1, %v2691_v53  ;;  %722 = vst.msk [vmem:[#allocation3 + $0x70] sm:$0xf] %vm693_vm1, %v2690_v54  ;;  %v564_v23 = vmul.f32 %v531_v29, %v3599_v45  ;;  %v563_v24 = vmul.f32 %v526_v30, %v3604_v46 }
 0x121   : > { %v2693_v43 = vpack.c.bf16 %v564_v23, %v564_v23  ;;  %v2692_v44 = vpack.c.bf16 %v563_v24, %v563_v24 }
 0x123   : > { %725 = vst.msk [vmem:[#allocation3 + $0x7c] sm:$0xf] %vm693_vm1, %v2693_v43  ;;  %724 = vst.msk [vmem:[#allocation3 + $0x78] sm:$0xf] %vm693_vm1, %v2692_v44 }
 0x124 PF: > { %p2511_p0 = scmp.le.s32.totalorder %s3121_s27, 0 }
 0x125   : > { %s2512_s19 = sshll.u32 (!%p2511_p0), %s3121_s27, 8 }
 0x126   : > { %729 = sbr.rel (%p2511_p0) target bundleno = 490 (0x1ea), region = 56  ;;  %s3778_s17 = scalar_lea.vmem (!%p2511_p0), [#allocation2], %s2512_s19 }
 0x12b   : > { %v732_v37 = vld [vmem:[%s4310_s2 + $0x10] sm:$0xff]  ;;  %v730_v38 = vld [vmem:[%s4310_s2] sm:$0xff]  ;;  %v3136_v45 = vmov 0   ;;  %v733_v46 = vld [vmem:[%s4310_s2 + $0x18] sm:$0xff]  ;;  %vm1116_vm2 = vcmask 27648  }
 0x12c   : > { %3022 = vset.pattern.permute.xlu1 %v3136_v45  ;;  %3021 = vset.pattern.permute.xlu0 %v3136_v45  ;;  %v731_v57 = vld [vmem:[%s4310_s2 + $0x8] sm:$0xff]  ;;  %v734_v61 = vld [vmem:[%s4310_s2 + $0x20] sm:$0xff]  ;;  %v737_v62 = vld [vmem:[%s4310_s2 + $0x38] sm:$0xff] }
 0x12d   : > { %808 = vperm.xlu1 %3022, %v732_v37   ;;  %798 = vperm.xlu0 %3021, %v730_v38   ;;  %v735_v58 = vld [vmem:[%s4310_s2 + $0x28] sm:$0xff]  ;;  %v736_v47 = vld [vmem:[%s4310_s2 + $0x30] sm:$0xff]  ;;  %v738_v31 = vld [vmem:[%s4310_s2 + $0x40] sm:$0xff] }
 0x12e   : > { %v739_v48 = vld [vmem:[%s4310_s2 + $0x48] sm:$0xff]  ;;  %v741_v32 = vld [vmem:[%s4310_s2 + $0x58] sm:$0xff]  ;;  %v740_v17 = vld [vmem:[%s4310_s2 + $0x50] sm:$0xff] }
 0x12f   : > { %v743_v18 = vld [vmem:[%s4310_s2 + $0x68] sm:$0xff]  ;;  %v742_v51 = vld [vmem:[%s4310_s2 + $0x60] sm:$0xff]  ;;  %v745_v52 = vld [vmem:[%s4310_s2 + $0x78] sm:$0xff] }
 0x130   : > { %v744_v21 = vld [vmem:[%s4310_s2 + $0x70] sm:$0xff]  ;;  %v747_v22 = vld [vmem:[%s4310_s2 + $0x88] sm:$0xff]  ;;  %v746_v33 = vld [vmem:[%s4310_s2 + $0x80] sm:$0xff] }
 0x131   : > { %813 = vperm.xlu1 %3022, %v733_v46   ;;  %803 = vperm.xlu0 %3021, %v731_v57   ;;  %v749_v34 = vld [vmem:[%s4310_s2 + $0x98] sm:$0xff]  ;;  %v748_v55 = vld [vmem:[%s4310_s2 + $0x90] sm:$0xff]  ;;  %v751_v56 = vld [vmem:[%s4310_s2 + $0xa8] sm:$0xff] }
 0x132   : > { %v750_v25 = vld [vmem:[%s4310_s2 + $0xa0] sm:$0xff]  ;;  %v753_v26 = vld [vmem:[%s4310_s2 + $0xb8] sm:$0xff]  ;;  %v752_v41 = vld [vmem:[%s4310_s2 + $0xb0] sm:$0xff] }
 0x133   : > { %v755_v42 = vld [vmem:[%s4310_s2 + $0xc8] sm:$0xff]  ;;  %v754_v59 = vld [vmem:[%s4310_s2 + $0xc0] sm:$0xff]  ;;  %v757_v60 = vld [vmem:[%s4310_s2 + $0xd8] sm:$0xff] }
 0x134   : > { %v756_v35 = vld [vmem:[%s4310_s2 + $0xd0] sm:$0xff]  ;;  %v759_v36 = vld [vmem:[%s4310_s2 + $0xe8] sm:$0xff]  ;;  %v758_v27 = vld [vmem:[%s4310_s2 + $0xe0] sm:$0xff] }
 0x135   : > { %823 = vperm.xlu1 %3022, %v735_v58   ;;  %818 = vperm.xlu0 %3021, %v734_v61   ;;  %v761_v28 = vld [vmem:[%s4310_s2 + $0xf8] sm:$0xff]  ;;  %v760_v63 = vld [vmem:[%s4310_s2 + $0xf0] sm:$0xff]  ;;  %v764_v49 = vld [vmem:[%s3778_s17] sm:$0xff] }
 0x136   : > { %v766_v12 = vld [vmem:[%s3778_s17 + $0x10] sm:$0xff]  ;;  %v767_v20 = vld [vmem:[%s3778_s17 + $0x18] sm:$0xff]  ;;  %v765_v53 = vld [vmem:[%s3778_s17 + $0x8] sm:$0xff] }
 0x137   : > { %v769_v44 = vld [vmem:[%s3778_s17 + $0x28] sm:$0xff]  ;;  %v768_v37 = vld [vmem:[%s3778_s17 + $0x20] sm:$0xff] }
 0x139   : > { %833 = vperm.xlu1 %3022, %v737_v62   ;;  %828 = vperm.xlu0 %3021, %v736_v47   ;;  %v771_v62 = vld [vmem:[%s3778_s17 + $0x38] sm:$0xff]  ;;  %v770_v47 = vld [vmem:[%s3778_s17 + $0x30] sm:$0xff] }
 0x13d   : > { %843 = vperm.xlu1 %3022, %v739_v48   ;;  %838 = vperm.xlu0 %3021, %v738_v31  }
 0x141   : > { %853 = vperm.xlu1 %3022, %v741_v32   ;;  %848 = vperm.xlu0 %3021, %v740_v17  }
 0x145   : > { %863 = vperm.xlu1 %3022, %v743_v18   ;;  %858 = vperm.xlu0 %3021, %v742_v51  }
 0x149   : > { %873 = vperm.xlu1 %3022, %v745_v52   ;;  %868 = vperm.xlu0 %3021, %v744_v21   ;;  %v773_v52 = vld [vmem:[%s3778_s17 + $0x48] sm:$0xff]  ;;  %v772_v21 = vld [vmem:[%s3778_s17 + $0x40] sm:$0xff] }
 0x14d   : > { %883 = vperm.xlu1 %3022, %v747_v22   ;;  %878 = vperm.xlu0 %3021, %v746_v33  }
 0x151   : > { %893 = vperm.xlu1 %3022, %v749_v34   ;;  %888 = vperm.xlu0 %3021, %v748_v55  }
 0x155   : > { %903 = vperm.xlu1 %3022, %v751_v56   ;;  %898 = vperm.xlu0 %3021, %v750_v25  }
 0x159   : > { %913 = vperm.xlu1 %3022, %v753_v26   ;;  %908 = vperm.xlu0 %3021, %v752_v41   ;;  %v775_v26 = vld [vmem:[%s3778_s17 + $0x58] sm:$0xff]  ;;  %v774_v41 = vld [vmem:[%s3778_s17 + $0x50] sm:$0xff] }
 0x15d   : > { %923 = vperm.xlu1 %3022, %v755_v42   ;;  %918 = vperm.xlu0 %3021, %v754_v59  }
 0x161   : > { %933 = vperm.xlu1 %3022, %v757_v60   ;;  %928 = vperm.xlu0 %3021, %v756_v35  }
 0x165   : > { %943 = vperm.xlu1 %3022, %v759_v36   ;;  %938 = vperm.xlu0 %3021, %v758_v27  }
 0x169   : > { %953 = vperm.xlu1 %3022, %v761_v28   ;;  %948 = vperm.xlu0 %3021, %v760_v63   ;;  %v777_v28 = vld [vmem:[%s3778_s17 + $0x68] sm:$0xff]  ;;  %v776_v63 = vld [vmem:[%s3778_s17 + $0x60] sm:$0xff] }
 0x1a8   : > { %v809_v50 = vpop.permute.xlu1 %808  ;;  %v799_v39 = vpop.permute.xlu0 %798 }
 0x1a9   : > { %v958_v40 = vmul.f32 %v809_v50, %v766_v12  ;;  %v956_v19 = vmul.f32 %v799_v39, %v764_v49 }
 0x1ab   : > { %v2696_v54 = vpack.c.bf16 %v958_v40, %v958_v40  ;;  %v2694_v29 = vpack.c.bf16 %v956_v19, %v956_v19 }
 0x1ac   : > { %v814_v30 = vpop.permute.xlu1 %813  ;;  %v804_v23 = vpop.permute.xlu0 %803 }
 0x1ad   : > { %1119 = vst.msk [vmem:[#allocation3 + $0x8] sm:$0xf] %vm1116_vm2, %v2696_v54  ;;  %1117 = vst.msk [vmem:[#allocation3] sm:$0xf] %vm1116_vm2, %v2694_v29  ;;  %v959_v24 = vmul.f32 %v814_v30, %v767_v20  ;;  %v957_v43 = vmul.f32 %v804_v23, %v765_v53  ;;  %v779_v20 = vld [vmem:[%s3778_s17 + $0x78] sm:$0xff]  ;;  %v778_v53 = vld [vmem:[%s3778_s17 + $0x70] sm:$0xff] }
 0x1af   : > { %v2697_v38 = vpack.c.bf16 %v959_v24, %v959_v24  ;;  %v2695_v45 = vpack.c.bf16 %v957_v43, %v957_v43 }
 0x1b0   : > { %v824_v46 = vpop.permute.xlu1 %823  ;;  %v819_v57 = vpop.permute.xlu0 %818 }
 0x1b1   : > { %1120 = vst.msk [vmem:[#allocation3 + $0xc] sm:$0xf] %vm1116_vm2, %v2697_v38  ;;  %1118 = vst.msk [vmem:[#allocation3 + $0x4] sm:$0xf] %vm1116_vm2, %v2695_v45  ;;  %v961_v58 = vmul.f32 %v824_v46, %v769_v44  ;;  %v960_v61 = vmul.f32 %v819_v57, %v768_v37  ;;  %v781_v44 = vld [vmem:[%s3778_s17 + $0x88] sm:$0xff]  ;;  %v780_v37 = vld [vmem:[%s3778_s17 + $0x80] sm:$0xff] }
 0x1b3   : > { %v2699_v48 = vpack.c.bf16 %v961_v58, %v961_v58  ;;  %v2698_v31 = vpack.c.bf16 %v960_v61, %v960_v61 }
 0x1b4   : > { %v834_v32 = vpop.permute.xlu1 %833  ;;  %v829_v17 = vpop.permute.xlu0 %828 }
 0x1b5   : > { %1122 = vst.msk [vmem:[#allocation3 + $0x14] sm:$0xf] %vm1116_vm2, %v2699_v48  ;;  %1121 = vst.msk [vmem:[#allocation3 + $0x10] sm:$0xf] %vm1116_vm2, %v2698_v31  ;;  %v963_v18 = vmul.f32 %v834_v32, %v771_v62  ;;  %v962_v51 = vmul.f32 %v829_v17, %v770_v47  ;;  %v783_v62 = vld [vmem:[%s3778_s17 + $0x98] sm:$0xff]  ;;  %v782_v47 = vld [vmem:[%s3778_s17 + $0x90] sm:$0xff] }
 0x1b7   : > { %v2701_v22 = vpack.c.bf16 %v963_v18, %v963_v18  ;;  %v2700_v33 = vpack.c.bf16 %v962_v51, %v962_v51 }
 0x1b8   : > { %v844_v34 = vpop.permute.xlu1 %843  ;;  %v839_v55 = vpop.permute.xlu0 %838 }
 0x1b9   : > { %1124 = vst.msk [vmem:[#allocation3 + $0x1c] sm:$0xf] %vm1116_vm2, %v2701_v22  ;;  %1123 = vst.msk [vmem:[#allocation3 + $0x18] sm:$0xf] %vm1116_vm2, %v2700_v33  ;;  %v965_v56 = vmul.f32 %v844_v34, %v773_v52  ;;  %v964_v25 = vmul.f32 %v839_v55, %v772_v21  ;;  %v785_v52 = vld [vmem:[%s3778_s17 + $0xa8] sm:$0xff]  ;;  %v784_v21 = vld [vmem:[%s3778_s17 + $0xa0] sm:$0xff] }
 0x1bb   : > { %v2703_v42 = vpack.c.bf16 %v965_v56, %v965_v56  ;;  %v2702_v59 = vpack.c.bf16 %v964_v25, %v964_v25 }
 0x1bc   : > { %v854_v60 = vpop.permute.xlu1 %853  ;;  %v849_v35 = vpop.permute.xlu0 %848 }
 0x1bd   : > { %1126 = vst.msk [vmem:[#allocation3 + $0x24] sm:$0xf] %vm1116_vm2, %v2703_v42  ;;  %1125 = vst.msk [vmem:[#allocation3 + $0x20] sm:$0xf] %vm1116_vm2, %v2702_v59  ;;  %v967_v36 = vmul.f32 %v854_v60, %v775_v26  ;;  %v966_v27 = vmul.f32 %v849_v35, %v774_v41  ;;  %v787_v26 = vld [vmem:[%s3778_s17 + $0xb8] sm:$0xff]  ;;  %v786_v41 = vld [vmem:[%s3778_s17 + $0xb0] sm:$0xff] }
 0x1bf   : > { %v2705_v12 = vpack.c.bf16 %v967_v36, %v967_v36  ;;  %v2704_v49 = vpack.c.bf16 %v966_v27, %v966_v27 }
 0x1c0   : > { %v864_v50 = vpop.permute.xlu1 %863  ;;  %v859_v39 = vpop.permute.xlu0 %858 }
 0x1c1   : > { %1128 = vst.msk [vmem:[#allocation3 + $0x2c] sm:$0xf] %vm1116_vm2, %v2705_v12  ;;  %1127 = vst.msk [vmem:[#allocation3 + $0x28] sm:$0xf] %vm1116_vm2, %v2704_v49  ;;  %v969_v40 = vmul.f32 %v864_v50, %v777_v28  ;;  %v968_v19 = vmul.f32 %v859_v39, %v776_v63  ;;  %v789_v28 = vld [vmem:[%s3778_s17 + $0xc8] sm:$0xff]  ;;  %v788_v63 = vld [vmem:[%s3778_s17 + $0xc0] sm:$0xff] }
 0x1c3   : > { %v2707_v54 = vpack.c.bf16 %v969_v40, %v969_v40  ;;  %v2706_v29 = vpack.c.bf16 %v968_v19, %v968_v19 }
 0x1c4   : > { %v874_v30 = vpop.permute.xlu1 %873  ;;  %v869_v23 = vpop.permute.xlu0 %868 }
 0x1c5   : > { %1130 = vst.msk [vmem:[#allocation3 + $0x34] sm:$0xf] %vm1116_vm2, %v2707_v54  ;;  %1129 = vst.msk [vmem:[#allocation3 + $0x30] sm:$0xf] %vm1116_vm2, %v2706_v29  ;;  %v971_v24 = vmul.f32 %v874_v30, %v779_v20  ;;  %v970_v43 = vmul.f32 %v869_v23, %v778_v53  ;;  %v791_v20 = vld [vmem:[%s3778_s17 + $0xd8] sm:$0xff]  ;;  %v790_v53 = vld [vmem:[%s3778_s17 + $0xd0] sm:$0xff] }
 0x1c7   : > { %v2709_v38 = vpack.c.bf16 %v971_v24, %v971_v24  ;;  %v2708_v45 = vpack.c.bf16 %v970_v43, %v970_v43 }
 0x1c8   : > { %v884_v46 = vpop.permute.xlu1 %883  ;;  %v879_v57 = vpop.permute.xlu0 %878 }
 0x1c9   : > { %1132 = vst.msk [vmem:[#allocation3 + $0x3c] sm:$0xf] %vm1116_vm2, %v2709_v38  ;;  %1131 = vst.msk [vmem:[#allocation3 + $0x38] sm:$0xf] %vm1116_vm2, %v2708_v45  ;;  %v973_v58 = vmul.f32 %v884_v46, %v781_v44  ;;  %v972_v61 = vmul.f32 %v879_v57, %v780_v37  ;;  %v793_v44 = vld [vmem:[%s3778_s17 + $0xe8] sm:$0xff]  ;;  %v792_v37 = vld [vmem:[%s3778_s17 + $0xe0] sm:$0xff] }
 0x1cb   : > { %v2711_v48 = vpack.c.bf16 %v973_v58, %v973_v58  ;;  %v2710_v31 = vpack.c.bf16 %v972_v61, %v972_v61 }
 0x1cc   : > { %v894_v32 = vpop.permute.xlu1 %893  ;;  %v889_v17 = vpop.permute.xlu0 %888 }
 0x1cd   : > { %1134 = vst.msk [vmem:[#allocation3 + $0x44] sm:$0xf] %vm1116_vm2, %v2711_v48  ;;  %1133 = vst.msk [vmem:[#allocation3 + $0x40] sm:$0xf] %vm1116_vm2, %v2710_v31  ;;  %v975_v18 = vmul.f32 %v894_v32, %v783_v62  ;;  %v974_v51 = vmul.f32 %v889_v17, %v782_v47  ;;  %v795_v62 = vld [vmem:[%s3778_s17 + $0xf8] sm:$0xff]  ;;  %v794_v47 = vld [vmem:[%s3778_s17 + $0xf0] sm:$0xff] }
 0x1cf   : > { %v2713_v22 = vpack.c.bf16 %v975_v18, %v975_v18  ;;  %v2712_v33 = vpack.c.bf16 %v974_v51, %v974_v51 }
 0x1d0   : > { %v904_v34 = vpop.permute.xlu1 %903  ;;  %v899_v55 = vpop.permute.xlu0 %898 }
 0x1d1   : > { %1136 = vst.msk [vmem:[#allocation3 + $0x4c] sm:$0xf] %vm1116_vm2, %v2713_v22  ;;  %1135 = vst.msk [vmem:[#allocation3 + $0x48] sm:$0xf] %vm1116_vm2, %v2712_v33  ;;  %v977_v56 = vmul.f32 %v904_v34, %v785_v52  ;;  %v976_v25 = vmul.f32 %v899_v55, %v784_v21 }
 0x1d3   : > { %v2715_v42 = vpack.c.bf16 %v977_v56, %v977_v56  ;;  %v2714_v59 = vpack.c.bf16 %v976_v25, %v976_v25 }
 0x1d4   : > { %v914_v60 = vpop.permute.xlu1 %913  ;;  %v909_v35 = vpop.permute.xlu0 %908 }
 0x1d5   : > { %1138 = vst.msk [vmem:[#allocation3 + $0x54] sm:$0xf] %vm1116_vm2, %v2715_v42  ;;  %1137 = vst.msk [vmem:[#allocation3 + $0x50] sm:$0xf] %vm1116_vm2, %v2714_v59  ;;  %v979_v36 = vmul.f32 %v914_v60, %v787_v26  ;;  %v978_v27 = vmul.f32 %v909_v35, %v786_v41 }
 0x1d7   : > { %v2717_v12 = vpack.c.bf16 %v979_v36, %v979_v36  ;;  %v2716_v49 = vpack.c.bf16 %v978_v27, %v978_v27 }
 0x1d8   : > { %v924_v50 = vpop.permute.xlu1 %923  ;;  %v919_v39 = vpop.permute.xlu0 %918 }
 0x1d9   : > { %1140 = vst.msk [vmem:[#allocation3 + $0x5c] sm:$0xf] %vm1116_vm2, %v2717_v12  ;;  %1139 = vst.msk [vmem:[#allocation3 + $0x58] sm:$0xf] %vm1116_vm2, %v2716_v49  ;;  %v981_v40 = vmul.f32 %v924_v50, %v789_v28  ;;  %v980_v19 = vmul.f32 %v919_v39, %v788_v63 }
 0x1db   : > { %v2719_v54 = vpack.c.bf16 %v981_v40, %v981_v40  ;;  %v2718_v29 = vpack.c.bf16 %v980_v19, %v980_v19 }
 0x1dc   : > { %v934_v30 = vpop.permute.xlu1 %933  ;;  %v929_v23 = vpop.permute.xlu0 %928 }
 0x1dd   : > { %1142 = vst.msk [vmem:[#allocation3 + $0x64] sm:$0xf] %vm1116_vm2, %v2719_v54  ;;  %1141 = vst.msk [vmem:[#allocation3 + $0x60] sm:$0xf] %vm1116_vm2, %v2718_v29  ;;  %v983_v24 = vmul.f32 %v934_v30, %v791_v20  ;;  %v982_v43 = vmul.f32 %v929_v23, %v790_v53 }
 0x1df   : > { %v2721_v38 = vpack.c.bf16 %v983_v24, %v983_v24  ;;  %v2720_v45 = vpack.c.bf16 %v982_v43, %v982_v43 }
 0x1e0   : > { %v944_v46 = vpop.permute.xlu1 %943  ;;  %v939_v57 = vpop.permute.xlu0 %938 }
 0x1e1   : > { %1144 = vst.msk [vmem:[#allocation3 + $0x6c] sm:$0xf] %vm1116_vm2, %v2721_v38  ;;  %1143 = vst.msk [vmem:[#allocation3 + $0x68] sm:$0xf] %vm1116_vm2, %v2720_v45  ;;  %v985_v58 = vmul.f32 %v944_v46, %v793_v44  ;;  %v984_v61 = vmul.f32 %v939_v57, %v792_v37 }
 0x1e3   : > { %v2723_v48 = vpack.c.bf16 %v985_v58, %v985_v58  ;;  %v2722_v31 = vpack.c.bf16 %v984_v61, %v984_v61 }
 0x1e4   : > { %v954_v32 = vpop.permute.xlu1 %953  ;;  %v949_v17 = vpop.permute.xlu0 %948 }
 0x1e5   : > { %1146 = vst.msk [vmem:[#allocation3 + $0x74] sm:$0xf] %vm1116_vm2, %v2723_v48  ;;  %1145 = vst.msk [vmem:[#allocation3 + $0x70] sm:$0xf] %vm1116_vm2, %v2722_v31  ;;  %v987_v18 = vmul.f32 %v954_v32, %v795_v62  ;;  %v986_v51 = vmul.f32 %v949_v17, %v794_v47 }
 0x1e7   : > { %v2725_v52 = vpack.c.bf16 %v987_v18, %v987_v18  ;;  %v2724_v21 = vpack.c.bf16 %v986_v51, %v986_v51 }
 0x1e9   : > { %1148 = vst.msk [vmem:[#allocation3 + $0x7c] sm:$0xf] %vm1116_vm2, %v2725_v52  ;;  %1147 = vst.msk [vmem:[#allocation3 + $0x78] sm:$0xf] %vm1116_vm2, %v2724_v21 }
 0x1ea PF: > { %v3026_v33 = vld [vmem:[#allocation3 + $0x38] sm:$0xff]   ;;  %v3028_v55 = vld [vmem:[#allocation3 + $0x30] sm:$0xff]   ;;  %v3029_v56 = vld [vmem:[#allocation3 + $0x68] sm:$0xff]   ;;  %v3137_v25 = vmov 0   ;;  %s1149_s9 = sshra.s32 %s3250_s16, 5  ;;  %s2564_s11 = sadd.s32 4294967295, %s3121_s27 }
 0x1eb   : > { %3024 = vset.pattern.permute.xlu1 %v3137_v25  ;;  %3023 = vset.pattern.permute.xlu0 %v3137_v25  ;;  %v3030_v26 = vld [vmem:[#allocation3 + $0x28] sm:$0xff]   ;;  %v3031_v41 = vld [vmem:[#allocation3 + $0x60] sm:$0xff]   ;;  %s2726_s20 = sshll.u32 %s1149_s9, 4  ;;  %v3036_v36 = vld [vmem:[#allocation3 + $0x10] sm:$0xff]   ;;  %p1519_p1 = scmp.gt.s32.totalorder %s2564_s11, 0  ;;  %vm1635_vm3 = vcmask 31744  }
 0x1ec   : > { %v3027_v34 = vld [vmem:[#allocation3 + $0x70] sm:$0xff]   ;;  %1415 = vperm.xlu1 %3024, %v3262_v2   ;;  %1405 = vperm.xlu0 %3023, %v3258_v0   ;;  %v3032_v42 = vld [vmem:[#allocation3 + $0x20] sm:$0xff]   ;;  %v3033_v2 = vld [vmem:[#allocation3 + $0x58] sm:$0xff]   ;;  %s3852_s10 = scalar_lea.vmem %s4311_s3, %s2726_s20  ;;  %s2563_s18 = sshll.u32 %s3121_s27, 8 }
 0x1ed   : > { %v3034_v0 = vld [vmem:[#allocation3 + $0x18] sm:$0xff]   ;;  %v1159_v59 = vld [vmem:[%s3852_s10 + $0x28] sm:$0xff]  ;;  %v1154_v27 = vld [vmem:[%s3852_s10] sm:$0xff]  ;;  %s2566_s15 = sadd.f32 -1.0, %s3290_s0  ;;  %s4337_s11 = smov (!%p1519_p1, %s2564_s11), 0 }
 0x1ee   : > { %v1171_v35 = vunpack.c.l.s8.bf16 %v1159_v59  ;;  %v1158_v28 = vld [vmem:[%s3852_s10 + $0x20] sm:$0xff]  ;;  %v1173_v63 = vunpack.c.h.s8.bf16 %v1159_v59  ;;  %v1161_v12 = vld [vmem:[%s3852_s10 + $0x38] sm:$0xff]  ;;  %v1164_v49 = vunpack.c.h.s8.bf16 %v1154_v27  ;;  %v1156_v39 = vld [vmem:[%s3852_s10 + $0x10] sm:$0xff]  ;;  %p1540_p2 = scmp.eq.s32.totalorder %s3121_s27, 0  ;;  %s1541_s19 = ssub.f32 0.0, %s3290_s0 }
 0x1ef   : > { %v1160_v40 = vld [vmem:[%s3852_s10 + $0x30] sm:$0xff]  ;;  %v1166_v19 = vunpack.c.l.s8.bf16 %v1156_v39  ;;  %v1177_v54 = vunpack.c.h.s8.bf16 %v1161_v12  ;;  %s1542_s17 = smul.f32 -2.0, %s3290_s0  ;;  %s1500_s9 = sadd.s32 %s2563_s18, %s3250_s16 }
 0x1f0   : > { %v3025_v22 = vld [vmem:[#allocation3 + $0x78] sm:$0xff]   ;;  %1420 = vperm.xlu1 %3024, %v3264_v3   ;;  %1410 = vperm.xlu0 %3023, %v3260_v1   ;;  %v3035_v1 = vld [vmem:[#allocation3 + $0x50] sm:$0xff]   ;;  %v1155_v3 = vld [vmem:[%s3852_s10 + $0x8] sm:$0xff]  ;;  %v1174_v20 = vunpack.c.l.s8.bf16 %v1160_v40  ;;  %s2565_s20 = sshll.u32 %s4337_s11, 8  ;;  %s1545_s21 = smul.f32 2.0, %s2566_s15 }
 0x1f1   : > { %2728 = vmatprep.subr.bf16.mxu0 %v3025_v22  ;;  %2921 = vmatprep.subr.bf16.mxu1 %v3025_v22  ;;  %v1163_v60 = vunpack.c.l.s8.bf16 %v1155_v3  ;;  %s4339_s19 = smov (!%p1540_p2, %s1541_s19), %s1542_s17  ;;  %s1522_s22 = sadd.s32 %s2565_s20, %s3250_s16 }
 0x1f2   : > { %2729 = vmatpush3.bf16.msra.mxu0 %v3026_v33  ;;  %2929 = vmatpush3.bf16.msra.mxu1 %v3026_v33  ;;  %s4341_s15 = smov (!%p1540_p2, %s2566_s15), %s1545_s21  ;;  %s3896_s1 = scalar_lea.vmem [#allocation2], %s1500_s9  ;;  %v3908_v52 = vstv %s4339_s19 }
 0x1f3   : > { %2730 = vmatprep.subr.bf16.mxu0 %v3027_v34  ;;  %2922 = vmatprep.subr.bf16.mxu1 %v3027_v34  ;;  %v1502_v58 = vld [vmem:[%s3896_s1] sm:$0xff]  ;;  %v3899_v61 = vstv %s4341_s15  ;;  %s3902_s0 = scalar_lea.vmem [#allocation2], %s1522_s22  ;;  %v1503_v25 = vld [vmem:[%s3896_s1 + $0x8] sm:$0xff]  ;;  %p2585_p4 = scmp.ne.s32.totalorder %s3121_s27, 1 }
 0x1f4   : > { %1430 = vperm.xlu1 %3024, %v3268_v5   ;;  %1425 = vperm.xlu0 %3023, %v3266_v4   ;;  %v3037_v4 = vld [vmem:[#allocation3 + $0x48] sm:$0xff]   ;;  %v1510_v47 = vld [vmem:[%s3896_s1 + $0x40] sm:$0xff]  ;;  %v1566_v34 = vmul.f32 %v3899_v61, %v1502_v58  ;;  %v1504_v58 = vld [vmem:[%s3896_s1 + $0x10] sm:$0xff]  ;;  %s4120_s17 = scalar_lea.vmem (!%p2585_p4), [#allocation2], %s3250_s16 }
 0x1f5   : > { %1338 = vmatprep.mubr.bf16.mxu0 %v1163_v60  ;;  %1370 = vmatprep.mubr.bf16.mxu1 %v1171_v35  ;;  %v3038_v5 = vld [vmem:[#allocation3 + $0x8] sm:$0xff]   ;;  %v1524_v32 = vld [vmem:[%s3902_s0] sm:$0xff] }
 0x1f6   : > { %2731 = vmatpush3.bf16.msra.mxu0 %v3028_v55  ;;  %2930 = vmatpush3.bf16.msra.mxu1 %v3028_v55  ;;  %v1532_v51 = vld [vmem:[%s3902_s0 + $0x40] sm:$0xff]  ;;  %v1525_v35 = vld [vmem:[%s3902_s0 + $0x8] sm:$0xff] }
 0x1f7   : > { %2732 = vmatprep.subr.bf16.mxu0 %v3029_v56  ;;  %2923 = vmatprep.subr.bf16.mxu1 %v3029_v56  ;;  %v1574_v56 = vmul.f32 %v3899_v61, %v1510_v47 }
 0x1f8   : > { %1440 = vperm.xlu1 %3024, %v3272_v7   ;;  %1435 = vperm.xlu0 %3023, %v3270_v6   ;;  %v3039_v6 = vld [vmem:[#allocation3 + $0x40] sm:$0xff]  }
 0x1f9   : > { %v3040_v7 = vld [vmem:[#allocation3] sm:$0xff]  }
 0x1fa   : > { %2733 = vmatpush3.bf16.msra.mxu0 %v3030_v26  ;;  %2931 = vmatpush3.bf16.msra.mxu1 %v3030_v26  ;;  %v1511_v26 = vld [vmem:[%s3896_s1 + $0x48] sm:$0xff] }
 0x1fb   : > { %2734 = vmatprep.subr.bf16.mxu0 %v3031_v41  ;;  %2924 = vmatprep.subr.bf16.mxu1 %v3031_v41 }
 0x1fc   : > { %1450 = vperm.xlu1 %3024, %v3276_v9   ;;  %1445 = vperm.xlu0 %3023, %v3274_v8   ;;  %v1162_v8 = vunpack.c.l.s8.bf16 %v1154_v27  ;;  %v1170_v9 = vunpack.c.l.s8.bf16 %v1158_v28 }
 0x1fe   : > { %2735 = vmatpush3.bf16.msra.mxu0 %v3032_v42  ;;  %2932 = vmatpush3.bf16.msra.mxu1 %v3032_v42 }
 0x1ff   : > { %2736 = vmatprep.subr.bf16.mxu0 %v3033_v2  ;;  %2925 = vmatprep.subr.bf16.mxu1 %v3033_v2 }
 0x200   : > { %1460 = vperm.xlu1 %3024, %v3280_v11   ;;  %1455 = vperm.xlu0 %3023, %v3278_v10   ;;  %v1165_v11 = vunpack.c.h.s8.bf16 %v1155_v3  ;;  %v1157_v10 = vld [vmem:[%s3852_s10 + $0x18] sm:$0xff]  ;;  %s1547_s10 = scalar_select %p1540_p2, 0.0, 1.0 }
 0x201   : > { %v1167_v50 = vunpack.c.l.s8.bf16 %v1157_v10  ;;  %v1169_v53 = vunpack.c.h.s8.bf16 %v1157_v10  ;;  %v3934_v10 = vld [vmem:[%s3902_s0 + $0x60] sm:$0xff] }
 0x202   : > { %2737 = vmatpush3.bf16.msra.mxu0 %v3034_v0  ;;  %2933 = vmatpush3.bf16.msra.mxu1 %v3034_v0  ;;  %v3905_v17 = vstv %s1547_s10 }
 0x203   : > { %2738 = vmatprep.subr.bf16.mxu0 %v3035_v1  ;;  %2926 = vmatprep.subr.bf16.mxu1 %v3035_v1  ;;  %v1599_v41 = vmul.f32 %v3905_v17, %v1524_v32  ;;  %v1607_v42 = vmul.f32 %v3905_v17, %v1532_v51 }
 0x204   : > { %1470 = vperm.xlu1 %3024, %v3284_v14   ;;  %1465 = vperm.xlu0 %3023, %v3282_v13   ;;  %v1172_v14 = vunpack.c.h.s8.bf16 %v1158_v28  ;;  %v1175_v13 = vunpack.c.l.s8.bf16 %v1161_v12  ;;  %v1526_v28 = vld [vmem:[%s3902_s0 + $0x10] sm:$0xff] }
 0x206   : > { %2739 = vmatpush3.bf16.msra.mxu0 %v3036_v36  ;;  %2934 = vmatpush3.bf16.msra.mxu1 %v3036_v36 }
 0x207   : > { %2740 = vmatprep.subr.bf16.mxu0 %v3037_v4  ;;  %2927 = vmatprep.subr.bf16.mxu1 %v3037_v4  ;;  %v1533_v4 = vld [vmem:[%s3902_s0 + $0x48] sm:$0xff] }
 0x208   : > { %1480 = vperm.xlu1 %3024, %v3288_v16   ;;  %1475 = vperm.xlu0 %3023, %v3286_v15   ;;  %v1168_v15 = vunpack.c.h.s8.bf16 %v1156_v39  ;;  %v1176_v16 = vunpack.c.h.s8.bf16 %v1160_v40  ;;  %v3941_v39 = vld [vmem:[%s3902_s0 + $0x68] sm:$0xff]  ;;  %v3944_v40 = vld [vmem:[%s3902_s0 + $0x30] sm:$0xff] }
 0x20a   : > { %2741 = vmatpush3.bf16.msra.mxu0 %v3038_v5  ;;  %2935 = vmatpush3.bf16.msra.mxu1 %v3038_v5  ;;  %v1567_v5 = vmul.f32 %v3899_v61, %v1503_v25  ;;  %v1505_v25 = vld [vmem:[%s3896_s1 + $0x18] sm:$0xff] }
 0x20b   : > { %2742 = vmatprep.subr.bf16.mxu0 %v3039_v6  ;;  %2928 = vmatprep.subr.bf16.mxu1 %v3039_v6  ;;  %v1575_v6 = vmul.f32 %v3899_v61, %v1511_v26 }
 0x20e   : > { %2743 = vmatpush3.bf16.msra.mxu0 %v3040_v7  ;;  %2936 = vmatpush3.bf16.msra.mxu1 %v3040_v7 }
 0x211   : > { %1339 = vmatmul.mubr.bf16.vlgmr.msra.gmra.mxu0 %v1162_v8  ;;  %1371 = vmatmul.mubr.bf16.vlgmr.msra.gmra.mxu1 %v1170_v9  ;;  %v1534_v8 = vld [vmem:[%s3902_s0 + $0x50] sm:$0xff]  ;;  %v3925_v9 = vld [vmem:[%s3902_s0 + $0x18] sm:$0xff] }
 0x212   : > { %1346 = vmatprep.mubr.bf16.mxu0 %v1165_v11  ;;  %1378 = vmatprep.mubr.bf16.mxu1 %v1173_v63  ;;  %v3928_v11 = vld [vmem:[%s3902_s0 + $0x58] sm:$0xff]  ;;  %v3931_v63 = vld [vmem:[%s3902_s0 + $0x20] sm:$0xff] }
 0x219   : > { %1347 = vmatmul.mubr.bf16.gmra.mxu0 %v1164_v49  ;;  %1379 = vmatmul.mubr.bf16.gmra.mxu1 %v1172_v14 }
 0x21a   : > { %1354 = vmatprep.mubr.bf16.mxu0 %v1167_v50  ;;  %1386 = vmatprep.mubr.bf16.mxu1 %v1175_v13  ;;  %v3938_v13 = vld [vmem:[%s3902_s0 + $0x28] sm:$0xff] }
 0x221   : > { %1355 = vmatmul.mubr.bf16.gmra.mxu0 %v1166_v19  ;;  %1387 = vmatmul.mubr.bf16.gmra.mxu1 %v1174_v20  ;;  %v1600_v19 = vmul.f32 %v3905_v17, %v1525_v35  ;;  %v1608_v20 = vmul.f32 %v3905_v17, %v1533_v4  ;;  %v1609_v35 = vmul.f32 %v3905_v17, %v1534_v8 }
 0x222   : > { %1362 = vmatprep.mubr.bf16.mxu0 %v1169_v53  ;;  %1394 = vmatprep.mubr.bf16.mxu1 %v1177_v54  ;;  %v1602_v8 = vmul.f32 %v3905_v17, %v3925_v9 }
 0x229   : > { %1363 = vmatmul.mubr.bf16.gmra.mxu0 %v1168_v15  ;;  %1395 = vmatmul.mubr.bf16.gmra.mxu1 %v1176_v16  ;;  %v3949_v15 = vld [vmem:[%s3902_s0 + $0x70] sm:$0xff]  ;;  %v3952_v16 = vld [vmem:[%s3902_s0 + $0x38] sm:$0xff] }
 0x267   : > { %v1406_v29 = vpop.permute.xlu0 %1405  ;;  %v3874_v30 = vpop.permute.xlu1 %1415 }
 0x26b   : > { %v3877_v23 = vpop.permute.xlu0 %1410  ;;  %v3879_v24 = vpop.permute.xlu1 %1420 }
 0x26f   : > { %v3883_v43 = vpop.permute.xlu0 %1425  ;;  %v3889_v44 = vpop.permute.xlu1 %1430 }
 0x273   : > { %v3891_v37 = vpop.permute.xlu0 %1435  ;;  %v3894_v46 = vpop.permute.xlu1 %1440 }
 0x277   : > { %v1446_v48 = vpop.permute.xlu0 %1445  ;;  %v1451_v1 = vpop.permute.xlu1 %1450 }
 0x2d1   : > { %v2744_v38 = vpop.f32.mrf.mxu0  ;;  %v2768_v45 = vpop.f32.mrf.mxu1 }
 0x2d3   : > { %v2745_v57 = vpop.f32.mrf.mxu0  ;;  %v2769_v62 = vpop.f32.mrf.mxu1 }
 0x2d4   : > { %v2746_v31 = vadd.f32 %v2745_v57, %v2744_v38  ;;  %v2770_v18 = vadd.f32 %v2769_v62, %v2768_v45  ;;  %v1512_v62 = vld [vmem:[%s3896_s1 + $0x50] sm:$0xff] }
 0x2d5   : > { %v2747_v21 = vpop.f32.mrf.mxu0  ;;  %v2771_v22 = vpop.f32.mrf.mxu1 }
 0x2d6   : > { %v1483_v33 = vmul.f32 %v2746_v31, %v1406_v29  ;;  %v1491_v55 = vmul.f32 %v2770_v18, %v1446_v48  ;;  %v3955_v29 = vld [vmem:[%s3902_s0 + $0x78] sm:$0xff]  ;;  %v1456_v18 = vpop.permute.xlu0 %1455 }
 0x2d7   : > { %v2748_v2 = vpop.f32.mrf.mxu0  ;;  %v2772_v0 = vpop.f32.mrf.mxu1 }
 0x2d8   : > { %v1549_v3 = vmul.f32 %v3908_v52, %v1483_v33  ;;  %v1557_v59 = vmul.f32 %v3908_v52, %v1491_v55  ;;  %v2749_v60 = vadd.f32 %v2748_v2, %v2747_v21  ;;  %v2773_v36 = vadd.f32 %v2772_v0, %v2771_v22 }
 0x2d9   : > { %v2750_v7 = vpop.f32.mrf.mxu0  ;;  %v2774_v27 = vpop.f32.mrf.mxu1  ;;  %v1568_v33 = vmul.f32 %v3899_v61, %v1504_v58  ;;  %v1576_v55 = vmul.f32 %v3899_v61, %v1512_v62 }
 0x2da   : > { %v1582_v12 = vadd.f32 %v1566_v34, %v1549_v3  ;;  %v1590_v49 = vadd.f32 %v1574_v56, %v1557_v59  ;;  %v1484_v14 = vmul.f32 %v2749_v60, %v3877_v23  ;;  %v1492_v50 = vmul.f32 %v2773_v36, %v1451_v1 }
 0x2db   : > { %v2751_v53 = vpop.f32.mrf.mxu0  ;;  %v2775_v54 = vpop.f32.mrf.mxu1  ;;  %v1601_v59 = vmul.f32 %v3905_v17, %v1526_v28 }
 0x2dc   : > { %v3957_v23 = vsub.f32 %v1582_v12, %v1599_v41  ;;  %v3959_v38 = vsub.f32 %v1590_v49, %v1607_v42  ;;  %v1550_v45 = vmul.f32 %v3908_v52, %v1484_v14  ;;  %v1558_v57 = vmul.f32 %v3908_v52, %v1492_v50  ;;  %v1513_v41 = vld [vmem:[%s3896_s1 + $0x58] sm:$0xff]  ;;  %v1461_v42 = vpop.permute.xlu1 %1460  ;;  %v1506_v12 = vld [vmem:[%s3896_s1 + $0x20] sm:$0xff] }
 0x2dd   : > { %v2752_v47 = vadd.f32 %v2751_v53, %v2750_v7  ;;  %v2776_v48 = vadd.f32 %v2775_v54, %v2774_v27  ;;  %v2753_v31 = vpop.f32.mrf.mxu0  ;;  %v2777_v32 = vpop.f32.mrf.mxu1  ;;  %v1577_v27 = vmul.f32 %v3899_v61, %v1513_v41  ;;  %v1514_v49 = vld [vmem:[%s3896_s1 + $0x60] sm:$0xff]  ;;  %v1570_v9 = vmul.f32 %v3899_v61, %v1506_v12 }
 0x2de   : > { %v1583_v51 = vadd.f32 %v1567_v5, %v1550_v45  ;;  %v1591_v21 = vadd.f32 %v1575_v6, %v1558_v57  ;;  %2569 = vst.msk [vmem:[%s3896_s1 + $0x100] sm:$0xff] %vm1635_vm3, %v3957_v23  ;;  %2577 = vst.msk [vmem:[%s3896_s1 + $0x140] sm:$0xff] %vm1635_vm3, %v3959_v38  ;;  %v1569_v6 = vmul.f32 %v3899_v61, %v1505_v25  ;;  %v1507_v25 = vld [vmem:[%s3896_s1 + $0x28] sm:$0xff] }
 0x2df   : > { %v1485_v22 = vmul.f32 %v2752_v47, %v3874_v30  ;;  %v1493_v34 = vmul.f32 %v2776_v48, %v1456_v18  ;;  %v2754_v56 = vpop.f32.mrf.mxu0  ;;  %v2778_v26 = vpop.f32.mrf.mxu1  ;;  %v1578_v47 = vmul.f32 %v3899_v61, %v1514_v49 }
 0x2e0   : > { %v3976_v2 = vsub.f32 %v1583_v51, %v1600_v19  ;;  %v3978_v0 = vsub.f32 %v1591_v21, %v1608_v20  ;;  %v2755_v1 = vadd.f32 %v2754_v56, %v2753_v31  ;;  %v2779_v30 = vadd.f32 %v2778_v26, %v2777_v32  ;;  %v1466_v20 = vpop.permute.xlu0 %1465 }
 0x2e1   : > { %v1551_v3 = vmul.f32 %v3908_v52, %v1485_v22  ;;  %v1559_v60 = vmul.f32 %v3908_v52, %v1493_v34  ;;  %v2756_v36 = vpop.f32.mrf.mxu0  ;;  %v2780_v4 = vpop.f32.mrf.mxu1  ;;  %v1603_v21 = vmul.f32 %v3905_v17, %v3931_v63  ;;  %v1611_v22 = vmul.f32 %v3905_v17, %v3934_v10  ;;  %v1515_v10 = vld [vmem:[%s3896_s1 + $0x68] sm:$0xff] }
 0x2e2   : > { %v1486_v5 = vmul.f32 %v2755_v1, %v3879_v24  ;;  %v1494_v7 = vmul.f32 %v2779_v30, %v1461_v42  ;;  %2570 = vst.msk [vmem:[%s3896_s1 + $0x108] sm:$0xff] %vm1635_vm3, %v3976_v2  ;;  %2578 = vst.msk [vmem:[%s3896_s1 + $0x148] sm:$0xff] %vm1635_vm3, %v3978_v0  ;;  %v1610_v24 = vmul.f32 %v3905_v17, %v3928_v11  ;;  %v1471_v30 = vpop.permute.xlu1 %1470 }
 0x2e3   : > { %v1584_v28 = vadd.f32 %v1568_v33, %v1551_v3  ;;  %v1592_v14 = vadd.f32 %v1576_v55, %v1559_v60  ;;  %v2757_v50 = vpop.f32.mrf.mxu0  ;;  %v2781_v19 = vpop.f32.mrf.mxu1 }
 0x2e4   : > { %v1552_v53 = vmul.f32 %v3908_v52, %v1486_v5  ;;  %v1560_v54 = vmul.f32 %v3908_v52, %v1494_v7  ;;  %v2758_v45 = vadd.f32 %v2757_v50, %v2756_v36  ;;  %v2782_v57 = vadd.f32 %v2781_v19, %v2780_v4  ;;  %v1476_v12 = vpop.permute.xlu0 %1475 }
 0x2e5   : > { %v4001_v58 = vsub.f32 %v1584_v28, %v1601_v59  ;;  %v4003_v62 = vsub.f32 %v1592_v14, %v1609_v35  ;;  %v2759_v11 = vpop.f32.mrf.mxu0  ;;  %v2783_v48 = vpop.f32.mrf.mxu1  ;;  %v1571_v35 = vmul.f32 %v3899_v61, %v1507_v25  ;;  %v1579_v4 = vmul.f32 %v3899_v61, %v1515_v10 }
 0x2e6   : > { %v1585_v31 = vadd.f32 %v1569_v6, %v1552_v53  ;;  %v1593_v32 = vadd.f32 %v1577_v27, %v1560_v54  ;;  %v1487_v18 = vmul.f32 %v2758_v45, %v3883_v43  ;;  %v1495_v51 = vmul.f32 %v2782_v57, %v1466_v20  ;;  %v1508_v6 = vld [vmem:[%s3896_s1 + $0x30] sm:$0xff] }
 0x2e7   : > { %v2760_v33 = vpop.f32.mrf.mxu0  ;;  %v2784_v34 = vpop.f32.mrf.mxu1  ;;  %2571 = vst.msk [vmem:[%s3896_s1 + $0x110] sm:$0xff] %vm1635_vm3, %v4001_v58  ;;  %2579 = vst.msk [vmem:[%s3896_s1 + $0x150] sm:$0xff] %vm1635_vm3, %v4003_v62  ;;  %v1516_v27 = vld [vmem:[%s3896_s1 + $0x70] sm:$0xff]  ;;  %v1612_v19 = vmul.f32 %v3905_v17, %v3941_v39  ;;  %v1572_v45 = vmul.f32 %v3899_v61, %v1508_v6  ;;  %v1605_v39 = vmul.f32 %v3905_v17, %v3944_v40 }
 0x2e8   : > { %v4018_v55 = vsub.f32 %v1585_v31, %v1602_v8  ;;  %v4020_v43 = vsub.f32 %v1593_v32, %v1610_v24  ;;  %v1553_v56 = vmul.f32 %v3908_v52, %v1487_v18  ;;  %v1561_v63 = vmul.f32 %v3908_v52, %v1495_v51 }
 0x2e9   : > { %v2761_v26 = vadd.f32 %v2760_v33, %v2759_v11  ;;  %v2785_v41 = vadd.f32 %v2784_v34, %v2783_v48  ;;  %v2762_v42 = vpop.f32.mrf.mxu0  ;;  %v2786_v1 = vpop.f32.mrf.mxu1  ;;  %v1604_v24 = vmul.f32 %v3905_v17, %v3938_v13  ;;  %v1517_v11 = vld [vmem:[%s3896_s1 + $0x78] sm:$0xff] }
 0x2ea   : > { %v1586_v3 = vadd.f32 %v1570_v9, %v1553_v56  ;;  %v1594_v59 = vadd.f32 %v1578_v47, %v1561_v63  ;;  %2572 = vst.msk [vmem:[%s3896_s1 + $0x118] sm:$0xff] %vm1635_vm3, %v4018_v55  ;;  %2580 = vst.msk [vmem:[%s3896_s1 + $0x158] sm:$0xff] %vm1635_vm3, %v4020_v43  ;;  %v1580_v9 = vmul.f32 %v3899_v61, %v1516_v27  ;;  %v1509_v47 = vld [vmem:[%s3896_s1 + $0x38] sm:$0xff]  ;;  %v1481_v33 = vpop.permute.xlu1 %1480 }
 0x2eb   : > { %v1488_v60 = vmul.f32 %v2761_v26, %v3889_v44  ;;  %v1496_v36 = vmul.f32 %v2785_v41, %v1471_v30  ;;  %v2763_v5 = vpop.f32.mrf.mxu0  ;;  %v2787_v7 = vpop.f32.mrf.mxu1  ;;  %v1573_v63 = vmul.f32 %v3899_v61, %v1509_v47  ;;  %v1581_v40 = vmul.f32 %v3899_v61, %v1517_v11 }
 0x2ec   : > { %v4037_v49 = vsub.f32 %v1586_v3, %v1603_v21  ;;  %v4039_v28 = vsub.f32 %v1594_v59, %v1611_v22  ;;  %v2764_v14 = vadd.f32 %v2763_v5, %v2762_v42  ;;  %v2788_v44 = vadd.f32 %v2787_v7, %v2786_v1 }
 0x2ed   : > { %v1554_v8 = vmul.f32 %v3908_v52, %v1488_v60  ;;  %v1562_v50 = vmul.f32 %v3908_v52, %v1496_v36  ;;  %v2765_v20 = vpop.f32.mrf.mxu0  ;;  %v2789_v53 = vpop.f32.mrf.mxu1  ;;  %v1606_v41 = vmul.f32 %v3905_v17, %v3952_v16  ;;  %v1614_v42 = vmul.f32 %v3905_v17, %v3955_v29 }
 0x2ee   : > { %v1489_v54 = vmul.f32 %v2764_v14, %v3891_v37  ;;  %v1497_v57 = vmul.f32 %v2788_v44, %v1476_v12  ;;  %2573 = vst.msk [vmem:[%s3896_s1 + $0x120] sm:$0xff] %vm1635_vm3, %v4037_v49  ;;  %2581 = vst.msk [vmem:[%s3896_s1 + $0x160] sm:$0xff] %vm1635_vm3, %v4039_v28  ;;  %v1613_v37 = vmul.f32 %v3905_v17, %v3949_v15 }
 0x2ef   : > { %v1587_v13 = vadd.f32 %v1571_v35, %v1554_v8  ;;  %v1595_v48 = vadd.f32 %v1579_v4, %v1562_v50  ;;  %v2766_v31 = vpop.f32.mrf.mxu0  ;;  %v2790_v32 = vpop.f32.mrf.mxu1 }
 0x2f0   : > { %v1555_v18 = vmul.f32 %v3908_v52, %v1489_v54  ;;  %v1563_v51 = vmul.f32 %v3908_v52, %v1497_v57  ;;  %v2767_v21 = vadd.f32 %v2766_v31, %v2765_v20  ;;  %v2791_v22 = vadd.f32 %v2790_v32, %v2789_v53 }
 0x2f1   : > { %v1620_v34 = vsub.f32 %v1587_v13, %v1604_v24  ;;  %v1628_v56 = vsub.f32 %v1595_v48, %v1612_v19 }
 0x2f2   : > { %v1588_v15 = vadd.f32 %v1572_v45, %v1555_v18  ;;  %v1596_v25 = vadd.f32 %v1580_v9, %v1563_v51  ;;  %v1490_v10 = vmul.f32 %v2767_v21, %v3894_v46  ;;  %v1498_v26 = vmul.f32 %v2791_v22, %v1481_v33 }
 0x2f3   : > { %2574 = vst.msk [vmem:[%s3896_s1 + $0x128] sm:$0xff] %vm1635_vm3, %v1620_v34  ;;  %2582 = vst.msk [vmem:[%s3896_s1 + $0x168] sm:$0xff] %vm1635_vm3, %v1628_v56 }
 0x2f4   : > { %v1621_v1 = vsub.f32 %v1588_v15, %v1605_v39  ;;  %v1629_v61 = vsub.f32 %v1596_v25, %v1613_v37  ;;  %v1556_v30 = vmul.f32 %v3908_v52, %v1490_v10  ;;  %v1564_v3 = vmul.f32 %v3908_v52, %v1498_v26 }
 0x2f6   : > { %v1589_v46 = vadd.f32 %v1573_v63, %v1556_v30  ;;  %v1597_v59 = vadd.f32 %v1581_v40, %v1564_v3  ;;  %2575 = vst.msk [vmem:[%s3896_s1 + $0x130] sm:$0xff] %vm1635_vm3, %v1621_v1  ;;  %2583 = vst.msk [vmem:[%s3896_s1 + $0x170] sm:$0xff] %vm1635_vm3, %v1629_v61  ;;  %1655 = sbr.rel (%p2585_p4) target bundleno = 1012 (0x3f4), region = 60 }
 0x2f8   : > { %v1622_v16 = vsub.f32 %v1589_v46, %v1606_v41  ;;  %v1630_v60 = vsub.f32 %v1597_v59, %v1614_v42 }
 0x2fa   : > { %2576 = vst.msk [vmem:[%s3896_s1 + $0x138] sm:$0xff] %vm1635_vm3, %v1622_v16  ;;  %2584 = vst.msk [vmem:[%s3896_s1 + $0x178] sm:$0xff] %vm1635_vm3, %v1630_v60 }
 0x2fb   : > { %v2586_v17 = vld [vmem:[%s4312_s4 + $0x8] sm:$0xf]  ;;  %vm1707_vm4 = vcmask 1043456   ;;  %2857 = vmatprep.mubr.msk.f32.mxu1 %vm1635_vm3, %v3959_v38  ;;  %2845 = vmatprep.mubr.msk.f32.mxu0 %vm1635_vm3, %v3957_v23  ;;  %v1895_v52 = vld [vmem:[%s4312_s4] sm:$0xf] }
 0x2fc   : > { %2937 = vmatprep.subr.msk.mxu1 %vm1707_vm4, %v2586_v17  ;;  %2843 = vmatprep.subr.msk.mxu0 %vm1707_vm4, %v2586_v17  ;;  %v2639_v29 = vld [vmem:[%s4312_s4 + $0x4] sm:$0xf]  ;;  %v4203_v40 = vld [vmem:[%s4313_s5] ss:$0 sm:$0xff] }
 0x2fd   : > { %2938 = vmatpush3.msk.msra.mxu1 %vm1707_vm4, %v2586_v17  ;;  %2844 = vmatpush3.msk.msra.mxu0 %vm1707_vm4, %v2586_v17 }
 0x2fe   : > { %2858 = vmatmul.mubr.msk.f32.vlgmr.msra.gmra.mxu1 %vm1635_vm3, %v3978_v0  ;;  %2869 = vmatprep.subr.msk.mxu1 %vm1707_vm4, %v1895_v52 }
 0x2ff   : > { %2846 = vmatmul.mubr.msk.f32.vlgmr.msra.gmra.mxu0 %vm1635_vm3, %v3976_v2  ;;  %2870 = vmatpush3.msk.msra.mxu1 %vm1707_vm4, %v1895_v52 }
 0x300   : > { %2895 = vmatprep.subr.msk.mxu0 %vm1707_vm4, %v2639_v29  ;;  %2860 = vmatprep.mubr.msk.f32.mxu1 %vm1635_vm3, %v4003_v62 }
 0x301   : > { %2896 = vmatpush3.msk.msra.mxu0 %vm1707_vm4, %v2639_v29  ;;  %2848 = vmatprep.mubr.msk.f32.mxu0 %vm1635_vm3, %v4001_v58  ;;  %v1879_v23 = vld [vmem:[%s4120_s17] sm:$0xff]  ;;  %v1880_v2 = vld [vmem:[%s4120_s17 + $0x8] sm:$0xff]  ;;  %v1881_v58 = vld [vmem:[%s4120_s17 + $0x10] sm:$0xff] }
 0x302   : > { %2861 = vmatmul.mubr.msk.f32.gmra.mxu1 %vm1635_vm3, %v4020_v43  ;;  %v2623_v38 = vld [vmem:[%s4120_s17 + $0x100] sm:$0xff]  ;;  %v2624_v0 = vld [vmem:[%s4120_s17 + $0x108] sm:$0xff]  ;;  %v2625_v62 = vld [vmem:[%s4120_s17 + $0x110] sm:$0xff] }
 0x303   : > { %2849 = vmatmul.mubr.msk.f32.gmra.mxu0 %vm1635_vm3, %v4018_v55  ;;  %2863 = vmatprep.mubr.msk.f32.mxu1 %vm1635_vm3, %v4039_v28  ;;  %v1882_v55 = vld [vmem:[%s4120_s17 + $0x18] sm:$0xff]  ;;  %v1883_v35 = vld [vmem:[%s4120_s17 + $0x20] sm:$0xff]  ;;  %v1884_v4 = vld [vmem:[%s4120_s17 + $0x28] sm:$0xff] }
 0x304   : > { %2851 = vmatprep.mubr.msk.f32.mxu0 %vm1635_vm3, %v4037_v49  ;;  %v2626_v43 = vld [vmem:[%s4120_s17 + $0x118] sm:$0xff]  ;;  %v2627_v36 = vld [vmem:[%s4120_s17 + $0x120] sm:$0xff]  ;;  %v2628_v5 = vld [vmem:[%s4120_s17 + $0x128] sm:$0xff] }
 0x305   : > { %v1885_v6 = vld [vmem:[%s4120_s17 + $0x30] sm:$0xff]  ;;  %v1886_v27 = vld [vmem:[%s4120_s17 + $0x38] sm:$0xff]  ;;  %v1887_v49 = vld [vmem:[%s4120_s17 + $0x40] sm:$0xff] }
 0x306   : > { %2864 = vmatmul.mubr.msk.f32.gmra.mxu1 %vm1635_vm3, %v1628_v56  ;;  %v2629_v7 = vld [vmem:[%s4120_s17 + $0x130] sm:$0xff]  ;;  %v2630_v12 = vld [vmem:[%s4120_s17 + $0x138] sm:$0xff]  ;;  %v2631_v28 = vld [vmem:[%s4120_s17 + $0x140] sm:$0xff] }
 0x307   : > { %2852 = vmatmul.mubr.msk.f32.gmra.mxu0 %vm1635_vm3, %v1620_v34  ;;  %2866 = vmatprep.mubr.msk.f32.mxu1 %vm1635_vm3, %v1629_v61  ;;  %v1888_v14 = vld [vmem:[%s4120_s17 + $0x48] sm:$0xff]  ;;  %v1889_v8 = vld [vmem:[%s4120_s17 + $0x50] sm:$0xff]  ;;  %v1890_v50 = vld [vmem:[%s4120_s17 + $0x58] sm:$0xff] }
 0x308   : > { %2854 = vmatprep.mubr.msk.f32.mxu0 %vm1635_vm3, %v1621_v1  ;;  %v2632_v44 = vld [vmem:[%s4120_s17 + $0x148] sm:$0xff]  ;;  %v2633_v24 = vld [vmem:[%s4120_s17 + $0x150] sm:$0xff]  ;;  %v2634_v19 = vld [vmem:[%s4120_s17 + $0x158] sm:$0xff] }
 0x309   : > { %v1891_v20 = vld [vmem:[%s4120_s17 + $0x60] sm:$0xff]  ;;  %v1892_v54 = vld [vmem:[%s4120_s17 + $0x68] sm:$0xff]  ;;  %v1893_v57 = vld [vmem:[%s4120_s17 + $0x70] sm:$0xff] }
 0x30a   : > { %2867 = vmatmul.mubr.msk.f32.gmra.mxu1 %vm1635_vm3, %v1630_v60  ;;  %v2635_v53 = vld [vmem:[%s4120_s17 + $0x160] sm:$0xff]  ;;  %v2636_v45 = vld [vmem:[%s4120_s17 + $0x168] sm:$0xff]  ;;  %v2637_v9 = vld [vmem:[%s4120_s17 + $0x170] sm:$0xff] }
 0x30b   : > { %2855 = vmatmul.mubr.msk.f32.gmra.mxu0 %vm1635_vm3, %v1622_v16  ;;  %2871 = vmatprep.mubr.msk.f32.mxu1 %vm1635_vm3, %v1879_v23  ;;  %v1894_v47 = vld [vmem:[%s4120_s17 + $0x78] sm:$0xff] }
 0x30c   : > { %2897 = vmatprep.mubr.msk.f32.mxu0 %vm1635_vm3, %v2623_v38  ;;  %v2638_v11 = vld [vmem:[%s4120_s17 + $0x178] sm:$0xff] }
 0x30e   : > { %2872 = vmatmul.mubr.msk.f32.vlgmr.msra.gmra.mxu1 %vm1635_vm3, %v1880_v2 }
 0x30f   : > { %2898 = vmatmul.mubr.msk.f32.vlgmr.msra.gmra.mxu0 %vm1635_vm3, %v2624_v0  ;;  %2874 = vmatprep.mubr.msk.f32.mxu1 %vm1635_vm3, %v1881_v58 }
 0x310   : > { %2900 = vmatprep.mubr.msk.f32.mxu0 %vm1635_vm3, %v2625_v62 }
 0x312   : > { %2875 = vmatmul.mubr.msk.f32.gmra.mxu1 %vm1635_vm3, %v1882_v55 }
 0x313   : > { %2901 = vmatmul.mubr.msk.f32.gmra.mxu0 %vm1635_vm3, %v2626_v43  ;;  %2877 = vmatprep.mubr.msk.f32.mxu1 %vm1635_vm3, %v1883_v35 }
 0x314   : > { %2903 = vmatprep.mubr.msk.f32.mxu0 %vm1635_vm3, %v2627_v36 }
 0x316   : > { %2878 = vmatmul.mubr.msk.f32.gmra.mxu1 %vm1635_vm3, %v1884_v4 }
 0x317   : > { %2904 = vmatmul.mubr.msk.f32.gmra.mxu0 %vm1635_vm3, %v2628_v5  ;;  %2880 = vmatprep.mubr.msk.f32.mxu1 %vm1635_vm3, %v1885_v6 }
 0x318   : > { %2906 = vmatprep.mubr.msk.f32.mxu0 %vm1635_vm3, %v2629_v7 }
 0x31a   : > { %2881 = vmatmul.mubr.msk.f32.gmra.mxu1 %vm1635_vm3, %v1886_v27 }
 0x31b   : > { %2907 = vmatmul.mubr.msk.f32.gmra.mxu0 %vm1635_vm3, %v2630_v12  ;;  %2883 = vmatprep.mubr.msk.f32.mxu1 %vm1635_vm3, %v1887_v49 }
 0x31c   : > { %2909 = vmatprep.mubr.msk.f32.mxu0 %vm1635_vm3, %v2631_v28 }
 0x31e   : > { %2884 = vmatmul.mubr.msk.f32.gmra.mxu1 %vm1635_vm3, %v1888_v14 }
 0x31f   : > { %2910 = vmatmul.mubr.msk.f32.gmra.mxu0 %vm1635_vm3, %v2632_v44  ;;  %2886 = vmatprep.mubr.msk.f32.mxu1 %vm1635_vm3, %v1889_v8 }
 0x320   : > { %2912 = vmatprep.mubr.msk.f32.mxu0 %vm1635_vm3, %v2633_v24 }
 0x322   : > { %2887 = vmatmul.mubr.msk.f32.gmra.mxu1 %vm1635_vm3, %v1890_v50 }
 0x323   : > { %2913 = vmatmul.mubr.msk.f32.gmra.mxu0 %vm1635_vm3, %v2634_v19  ;;  %2889 = vmatprep.mubr.msk.f32.mxu1 %vm1635_vm3, %v1891_v20 }
 0x324   : > { %2915 = vmatprep.mubr.msk.f32.mxu0 %vm1635_vm3, %v2635_v53 }
 0x326   : > { %2890 = vmatmul.mubr.msk.f32.gmra.mxu1 %vm1635_vm3, %v1892_v54 }
 0x327   : > { %2916 = vmatmul.mubr.msk.f32.gmra.mxu0 %vm1635_vm3, %v2636_v45  ;;  %2892 = vmatprep.mubr.msk.f32.mxu1 %vm1635_vm3, %v1893_v57 }
 0x328   : > { %2918 = vmatprep.mubr.msk.f32.mxu0 %vm1635_vm3, %v2637_v9 }
 0x32a   : > { %2893 = vmatmul.mubr.msk.f32.gmra.mxu1 %vm1635_vm3, %v1894_v47 }
 0x32b   : > { %2919 = vmatmul.mubr.msk.f32.gmra.mxu0 %vm1635_vm3, %v2638_v11 }
 0x3be   : > { %v2859_v13 = vpop.f32.mrf.mxu1 }
 0x3bf   : > { %v2847_v48 = vpop.f32.mrf.mxu0  ;;  %v1871_v54 = vadd.f32 %v2859_v13, %v4203_v40 }
 0x3c0   : > { %v4188_v39 = vpop.f32.mrf.mxu1  ;;  %v1863_v25 = vadd.f32 %v2847_v48, %v4203_v40 }
 0x3c1   : > { %v1777_v37 = vpop.f32.mrf.mxu0  ;;  %v1870_v48 = vadd.f32 %v4203_v40, %v4188_v39 }
 0x3c2   : > { %v4190_v31 = vpop.f32.mrf.mxu1  ;;  %v1862_v41 = vadd.f32 %v4203_v40, %v1777_v37 }
 0x3c3   : > { %v2850_v32 = vpop.f32.mrf.mxu0  ;;  %v1873_v13 = vadd.f32 %v4190_v31, %v4203_v40 }
 0x3c4   : > { %v4192_v18 = vpop.f32.mrf.mxu1  ;;  %v1865_v30 = vadd.f32 %v2850_v32, %v4203_v40 }
 0x3c5   : > { %v1787_v51 = vpop.f32.mrf.mxu0  ;;  %v1872_v39 = vadd.f32 %v4203_v40, %v4192_v18 }
 0x3c6   : > { %v4194_v21 = vpop.f32.mrf.mxu1  ;;  %v1864_v60 = vadd.f32 %v4203_v40, %v1787_v51 }
 0x3c7   : > { %v2853_v22 = vpop.f32.mrf.mxu0  ;;  %v1875_v31 = vadd.f32 %v4194_v21, %v4203_v40 }
 0x3c8   : > { %v4196_v33 = vpop.f32.mrf.mxu1  ;;  %v1867_v2 = vadd.f32 %v2853_v22, %v4203_v40 }
 0x3c9   : > { %v1797_v34 = vpop.f32.mrf.mxu0  ;;  %v1874_v18 = vadd.f32 %v4203_v40, %v4196_v33 }
 0x3ca   : > { %v4198_v56 = vpop.f32.mrf.mxu1  ;;  %v1866_v35 = vadd.f32 %v4203_v40, %v1797_v34 }
 0x3cb   : > { %v2856_v63 = vpop.f32.mrf.mxu0  ;;  %v1877_v21 = vadd.f32 %v4198_v56, %v4203_v40 }
 0x3cc   : > { %v4205_v15 = vpop.f32.mrf.mxu1  ;;  %v1869_v27 = vadd.f32 %v2856_v63, %v4203_v40 }
 0x3cd   : > { %v1807_v10 = vpop.f32.mrf.mxu0  ;;  %v1876_v33 = vadd.f32 %v4203_v40, %v4205_v15 }
 0x3ce   : > { %v2873_v26 = vpop.f32.mrf.mxu1  ;;  %v1868_v8 = vadd.f32 %v4203_v40, %v1807_v10 }
 0x3cf   : > { %v2093_v42 = vadd.f32 %v2873_v26, %v1863_v25  ;;  %v2899_v1 = vpop.f32.mrf.mxu0 }
 0x3d0   : > { %v2013_v61 = vpop.f32.mrf.mxu1 }
 0x3d1   : > { %v2325_v3 = vadd.f32 %v2899_v1, %v2093_v42  ;;  %v2092_v46 = vadd.f32 %v2013_v61, %v1862_v41  ;;  %v2245_v59 = vpop.f32.mrf.mxu0 }
 0x3d2   : > { %v2876_v16 = vpop.f32.mrf.mxu1 }
 0x3d3   : > { %v2341_v17 = vmax.f32 %v2325_v3, 0.0  ;;  %v2324_v52 = vadd.f32 %v2245_v59, %v2092_v46  ;;  %v2095_v29 = vadd.f32 %v2876_v16, %v1865_v30  ;;  %v2902_v23 = vpop.f32.mrf.mxu0 }
 0x3d4   : > { %v2023_v38 = vpop.f32.mrf.mxu1 }
 0x3d5   : > { %2357 = vst [vmem:[%s3292_s7 + $0x8] sm:$0xff] %v2341_v17  ;;  %v2340_v0 = vmax.f32 %v2324_v52, 0.0  ;;  %v2327_v58 = vadd.f32 %v2902_v23, %v2095_v29  ;;  %v2094_v62 = vadd.f32 %v2023_v38, %v1864_v60  ;;  %v2255_v55 = vpop.f32.mrf.mxu0 }
 0x3d6   : > { %v2879_v43 = vpop.f32.mrf.mxu1 }
 0x3d7   : > { %2356 = vst [vmem:[%s3292_s7] sm:$0xff] %v2340_v0  ;;  %v2343_v36 = vmax.f32 %v2327_v58, 0.0  ;;  %v2326_v4 = vadd.f32 %v2255_v55, %v2094_v62  ;;  %v2097_v5 = vadd.f32 %v2879_v43, %v1867_v2  ;;  %v2905_v6 = vpop.f32.mrf.mxu0 }
 0x3d8   : > { %v2033_v7 = vpop.f32.mrf.mxu1 }
 0x3d9   : > { %2359 = vst [vmem:[%s3292_s7 + $0x18] sm:$0xff] %v2343_v36  ;;  %v2342_v12 = vmax.f32 %v2326_v4, 0.0  ;;  %v2329_v49 = vadd.f32 %v2905_v6, %v2097_v5  ;;  %v2096_v28 = vadd.f32 %v2033_v7, %v1866_v35  ;;  %v2265_v14 = vpop.f32.mrf.mxu0 }
 0x3da   : > { %v2882_v44 = vpop.f32.mrf.mxu1 }
 0x3db   : > { %2358 = vst [vmem:[%s3292_s7 + $0x10] sm:$0xff] %v2342_v12  ;;  %v2345_v24 = vmax.f32 %v2329_v49, 0.0  ;;  %v2328_v50 = vadd.f32 %v2265_v14, %v2096_v28  ;;  %v2099_v19 = vadd.f32 %v2882_v44, %v1869_v27  ;;  %v2908_v20 = vpop.f32.mrf.mxu0 }
 0x3dc   : > { %v2043_v53 = vpop.f32.mrf.mxu1 }
 0x3dd   : > { %2361 = vst [vmem:[%s3292_s7 + $0x28] sm:$0xff] %v2345_v24  ;;  %v2344_v45 = vmax.f32 %v2328_v50, 0.0  ;;  %v2331_v57 = vadd.f32 %v2908_v20, %v2099_v19  ;;  %v2098_v9 = vadd.f32 %v2043_v53, %v1868_v8  ;;  %v2275_v47 = vpop.f32.mrf.mxu0 }
 0x3de   : > { %v2885_v11 = vpop.f32.mrf.mxu1 }
 0x3df   : > { %2360 = vst [vmem:[%s3292_s7 + $0x20] sm:$0xff] %v2344_v45  ;;  %v2347_v37 = vmax.f32 %v2331_v57, 0.0  ;;  %v2330_v32 = vadd.f32 %v2275_v47, %v2098_v9  ;;  %v2101_v51 = vadd.f32 %v2885_v11, %v1871_v54  ;;  %v2911_v22 = vpop.f32.mrf.mxu0 }
 0x3e0   : > { %v2053_v34 = vpop.f32.mrf.mxu1 }
 0x3e1   : > { %2363 = vst [vmem:[%s3292_s7 + $0x38] sm:$0xff] %v2347_v37  ;;  %v2346_v63 = vmax.f32 %v2330_v32, 0.0  ;;  %v2333_v25 = vadd.f32 %v2911_v22, %v2101_v51  ;;  %v2100_v10 = vadd.f32 %v2053_v34, %v1870_v48  ;;  %v2285_v26 = vpop.f32.mrf.mxu0 }
 0x3e2   : > { %v2888_v41 = vpop.f32.mrf.mxu1 }
 0x3e3   : > { %2362 = vst [vmem:[%s3292_s7 + $0x30] sm:$0xff] %v2346_v63  ;;  %v2349_v42 = vmax.f32 %v2333_v25, 0.0  ;;  %v2332_v1 = vadd.f32 %v2285_v26, %v2100_v10  ;;  %v2103_v61 = vadd.f32 %v2888_v41, %v1873_v13  ;;  %v2914_v30 = vpop.f32.mrf.mxu0 }
 0x3e4   : > { %v2063_v3 = vpop.f32.mrf.mxu1 }
 0x3e5   : > { %2365 = vst [vmem:[%s3292_s7 + $0x48] sm:$0xff] %v2349_v42  ;;  %v2348_v46 = vmax.f32 %v2332_v1, 0.0  ;;  %v2335_v59 = vadd.f32 %v2914_v30, %v2103_v61  ;;  %v2102_v16 = vadd.f32 %v2063_v3, %v1872_v39  ;;  %v2295_v60 = vpop.f32.mrf.mxu0 }
 0x3e6   : > { %v2891_v17 = vpop.f32.mrf.mxu1 }
 0x3e7   : > { %2364 = vst [vmem:[%s3292_s7 + $0x40] sm:$0xff] %v2348_v46  ;;  %v2351_v52 = vmax.f32 %v2335_v59, 0.0  ;;  %v2334_v29 = vadd.f32 %v2295_v60, %v2102_v16  ;;  %v2105_v23 = vadd.f32 %v2891_v17, %v1875_v31  ;;  %v2917_v38 = vpop.f32.mrf.mxu0 }
 0x3e8   : > { %v2073_v2 = vpop.f32.mrf.mxu1 }
 0x3e9   : > { %2367 = vst [vmem:[%s3292_s7 + $0x58] sm:$0xff] %v2351_v52  ;;  %v2350_v0 = vmax.f32 %v2334_v29, 0.0  ;;  %v2337_v58 = vadd.f32 %v2917_v38, %v2105_v23  ;;  %v2104_v62 = vadd.f32 %v2073_v2, %v1874_v18  ;;  %v2305_v55 = vpop.f32.mrf.mxu0 }
 0x3ea   : > { %v2894_v43 = vpop.f32.mrf.mxu1 }
 0x3eb   : > { %2366 = vst [vmem:[%s3292_s7 + $0x50] sm:$0xff] %v2350_v0  ;;  %v2353_v35 = vmax.f32 %v2337_v58, 0.0  ;;  %v2336_v36 = vadd.f32 %v2305_v55, %v2104_v62  ;;  %v2107_v4 = vadd.f32 %v2894_v43, %v1877_v21  ;;  %v2920_v5 = vpop.f32.mrf.mxu0 }
 0x3ec   : > { %v2083_v6 = vpop.f32.mrf.mxu1 }
 0x3ed   : > { %2369 = vst [vmem:[%s3292_s7 + $0x68] sm:$0xff] %v2353_v35  ;;  %v2352_v56 = vmax.f32 %v2336_v36, 0.0  ;;  %v2339_v7 = vadd.f32 %v2920_v5, %v2107_v4  ;;  %v2106_v27 = vadd.f32 %v2083_v6, %v1876_v33  ;;  %v2315_v12 = vpop.f32.mrf.mxu0 }
 0x3ef   : > { %2368 = vst [vmem:[%s3292_s7 + $0x60] sm:$0xff] %v2352_v56  ;;  %v2355_v49 = vmax.f32 %v2339_v7, 0.0  ;;  %v2338_v28 = vadd.f32 %v2315_v12, %v2106_v27 }
 0x3f1   : > { %2371 = vst [vmem:[%s3292_s7 + $0x78] sm:$0xff] %v2355_v49  ;;  %v2354_v14 = vmax.f32 %v2338_v28, 0.0 }
 0x3f3   : > { %2370 = vst [vmem:[%s3292_s7 + $0x70] sm:$0xff] %v2354_v14 }
 0x3f4 PF: > { %s2727_s20 = sshll.u32 %s3117_s26, 11  ;;  %s2386_s0 = sshll.u32 %s3292_s7, 4  ;;  %s4253_s0 = int_to_ptr.vmem [resolvable:$true] %s2386_s0 }
 0x3f5   : > { %s4250_s10 = scalar_lea.hbm %s4314_s6, %s2727_s20  ;;  %s4321_s11 = sand.u32 1, %s3109_s24  }
 0x3f6   : > { %s4257_s18 = scalar_lea.sflag [#allocation6], %s4321_s11  ;;  %s3041_s15 = scalar_lea.vmem %s4253_s0, 2048 }
 0x3f7   : > { %p3042_p5 = scmp.ne.s32.totalorder %s4253_s0, %s3041_s15  ;;  %s3138_s26 = smov [#allocation5]  }
 0x3f8   : > { %s3045_s19 = sshll.u32 %s3138_s26, 4  ;;  %s3046_s19 = int_to_ptr.vmem [resolvable:$false] %s3045_s19 }
 0x3f9   : > { %p3043_p6 = pnand %p3042_p5, %p3231_p3  ;;  %s3047_s1 = scalar_lea.vmem %s3046_s19, 4096 }
 0x3fa   : > { %p3048_p9 = scmp.lt.s32.totalorder %s4253_s0, %s3046_s19  ;;  %p3049_p10 = scmp.lt.s32.totalorder %s3047_s1, %s3041_s15 }
 0x3fb   : > { %p3044_p7 = pneg %p3043_p6 }
 0x3fc   : > { %p3050_p11 = por %p3049_p10, %p3048_p9 }
 0x3fe   : > { %p3051_p12 = pnand %p3050_p11, %p3044_p7 }
 0x400   : > { %3054 = shalt.err (!%p3051_p12)
}
 0x401   : > { %s3055_s7 = scalar_lea.hbm %s4250_s10, 2048  ;;  %s3059_s16 = scalar_lea.hbm %s4314_s6, 4096 }
 0x402   : > { %p3056_p13 = scmp.ne.s32.totalorder %s4250_s10, %s3055_s7  ;;  %p3060_p2 = scmp.lt.s32.totalorder %s4250_s10, %s4314_s6 }
 0x403   : > { %p3061_p4 = scmp.lt.s32.totalorder %s3059_s16, %s3055_s7 }
 0x404   : > { %p3057_p0 = pnand %p3056_p13, %p3231_p3 }
 0x405   : > { %p3062_p5 = por %p3061_p4, %p3060_p2 }
 0x406   : > { %p3058_p1 = pneg %p3057_p0 }
 0x408   : > { %p3063_p6 = pnand %p3062_p5, %p3058_p1 }
 0x40a   : > { %3066 = shalt.err (!%p3063_p6)
}
 0x40b   : > { %s3139_s21 = smov 128   ;;  %s3140_s22 = smov 8  }
 0x40c   : > { %2941 = dma.vmem_to_hbm [thread:$0]  (%p3231_p3), %s4253_s0, 2048, %s4250_s10, %s4257_s18, %s3139_s21, %s3139_s21, %s3140_s22  }
 0x40d PF: > { %p2947_p7 = scmp.ge.s32.totalorder %s3133_s30, 2  ;;  %s2401_s11 = sand.u32 1, %s3105_s23  }
 0x40e   : > { %s2402_s15 = scalar_lea.sflag [#allocation6], %s2401_s11 }
 0x40f   : > { %p2944_p9 = pnand %p2947_p7, %p3242_p8 }
 0x411   : > { %p2945_p10 = pneg %p2944_p9 }
 0x413   : > { %3100 = dma.done.wait (%p2945_p10), %s2402_s15, 2048  }
 0x414   : > { %3102 = vsyncadd (%p2945_p10), %s2402_s15, 4294965248  ;;  %s20_s30 = sadd.s32 1, %s3133_s30   ;;  %s4322_s12 = sld [smem:[#allocation8_spill]] }
 0x415   : > { %p17_p11 = scmp.ge.s32.totalorder %s20_s30, 6   ;;  %s4323_s23 = smov %s3109_s24 }
 0x416   : > { %s4324_s24 = smov %s3113_s25  ;;  %s4325_s25 = smov %s3240_s13 }
 0x417   : > { %s4326_s26 = smov %s3125_s28  ;;  %s4327_s27 = smov %s3129_s29 }
 0x418   : > { %s4328_s28 = smov %s4331_s8  ;;  %19 = sbr.rel (!%p17_p11) target bundleno = 8 (0x8), region = 102 }
 0x41a   : > { %s4329_s29 = smov %s4322_s12 }
 0x41d   :  { %2407 = vsyncpa [#allocation6], 1 }
 0x41e   :  { %2409 = vsyncpa [#allocation6 + $0x1], 1 }

</bundles_post_ra>
